<compile_context>
chip_gen: v7x
topology: tpu7x:2x2x1
jax: 0.10.0
libtpu: 0.0.40
codegen_flags: <defaults>
</compile_context>

<pallas_src>
import functools

import jax
import jax.numpy as jnp
from jax.experimental import pallas as pl
from jax.experimental.pallas import tpu as pltpu  # noqa: F401  (TPU backend)

# ---------------- config (small, consistent with the module) ----------------
B = 2          # batch
T = 8          # sequence length (context)
C = 32         # n_embedding_dimensions
N_HEAD = 4     # n_head  (head_dim = 8)
LN_EPS = 1e-5
GELU_C = 0.7978845608028654  # sqrt(2/pi)
NEG_BIG = -1e30              # finite "minus infinity" for masking


# ------------------------------- kernel -------------------------------------
def block_kernel(x_ref,
                 g1_ref, b1_ref,
                 wq_ref, bq_ref, wk_ref, bk_ref, wv_ref, bv_ref,
                 wpr_ref, bpr_ref,
                 g2_ref, b2_ref,
                 wfc_ref, bfc_ref,
                 wp2_ref, bp2_ref,
                 o_ref,
                 *, n_batch, seq_len, n_head):
    x = x_ref[...]                       # (B*T, C) f32
    _, c = x.shape
    t = seq_len

    def layernorm(h, g, b):
        mu = jnp.mean(h, axis=-1, keepdims=True)
        var = jnp.mean((h - mu) ** 2, axis=-1, keepdims=True)
        return (h - mu) * jax.lax.rsqrt(var + LN_EPS) * g + b

    # ---- attention branch ----
    h1 = layernorm(x, g1_ref[...], b1_ref[...])          # f32 (B*T, C)

    row = jax.lax.broadcasted_iota(jnp.int32, (t, t), 0)
    col = jax.lax.broadcasted_iota(jnp.int32, (t, t), 1)
    causal = row >= col

    # q @ k^T without materializing a transpose: contract last dims of both.
    nt_dims = (((1,), (1,)), ((), ()))

    batch_attn = []
    for b in range(n_batch):                              # static, tiny (B=2)
        hb = h1[b * t:(b + 1) * t, :].astype(jnp.bfloat16)  # (T, C) bf16
        acc = jnp.zeros((t, c), jnp.float32)
        for hh in range(n_head):                          # static, per-head slabs
            # per-head projections (scale already folded into wq/bq)
            q = jnp.dot(hb, wq_ref[hh], preferred_element_type=jnp.float32) + bq_ref[hh]
            k = jnp.dot(hb, wk_ref[hh], preferred_element_type=jnp.float32) + bk_ref[hh]
            v = jnp.dot(hb, wv_ref[hh], preferred_element_type=jnp.float32) + bv_ref[hh]

            s = jax.lax.dot_general(q.astype(jnp.bfloat16), k.astype(jnp.bfloat16),
                                    nt_dims, preferred_element_type=jnp.float32)
            s = jnp.where(causal, s, NEG_BIG)
            m = jnp.max(s, axis=-1, keepdims=True)
            p = jnp.exp(s - m)
            p = p * pl.reciprocal(jnp.sum(p, axis=-1, keepdims=True), approx=True)

            oh = jnp.dot(p.astype(jnp.bfloat16), v.astype(jnp.bfloat16),
                         preferred_element_type=jnp.float32)           # (T, hd)
            # fold the head output straight through its slice of c_proj:
            acc = acc + jnp.dot(oh.astype(jnp.bfloat16), wpr_ref[hh],
                                preferred_element_type=jnp.float32)    # (T, C)
        batch_attn.append(acc)

    attn = jnp.concatenate(batch_attn, axis=0) + bpr_ref[...]          # (B*T, C)
    x1 = x + attn

    # ---- MLP branch ----
    h2 = layernorm(x1, g2_ref[...], b2_ref[...])
    fc = jnp.dot(h2.astype(jnp.bfloat16), wfc_ref[...],
                 preferred_element_type=jnp.float32) + bfc_ref[...]    # (B*T, 4C)
    g = 0.5 * fc * (1.0 + jnp.tanh(GELU_C * (fc + 0.044715 * fc * fc * fc)))
    mlp = jnp.dot(g.astype(jnp.bfloat16), wp2_ref[...],
                  preferred_element_type=jnp.float32) + bp2_ref[...]

    o_ref[...] = x1 + mlp
    # TODO(synk): output lane width is C=32 (<128); a fully lane-dense out slab
    # would require an in-kernel (B*T, C)->(x,128) relayout, skipped for safety.


# ------------------------------- wrapper -------------------------------------
def gpt2_block(x, params, n_head):
    b, t, c = x.shape
    hd = c // n_head
    f32 = jnp.float32
    bf16 = jnp.bfloat16

    # split the fused qkv weight into per-head slabs in the wrapper (pure layout
    # plumbing), and fold the attention scale into the Q weights/bias.
    wq, wk, wv = jnp.split(params["wqkv"], 3, axis=1)     # each (C, C)
    bq, bk, bv = jnp.split(params["bqkv"], 3)             # each (C,)
    scale = 1.0 / jnp.sqrt(jnp.float32(hd))
    wq = wq * scale
    bq = bq * scale

    def head_major_w(w):   # (C, C) -> (H, C, hd) bf16
        return w.reshape(c, n_head, hd).transpose(1, 0, 2).astype(bf16)

    def head_major_b(v):   # (C,) -> (H, 1, hd) f32
        return v.reshape(n_head, 1, hd).astype(f32)

    args = [
        x.reshape(b * t, c).astype(f32),
        params["g1"].reshape(1, c).astype(f32), params["b1"].reshape(1, c).astype(f32),
        head_major_w(wq), head_major_b(bq),
        head_major_w(wk), head_major_b(bk),
        head_major_w(wv), head_major_b(bv),
        params["wproj"].reshape(n_head, hd, c).astype(bf16),
        params["bproj"].reshape(1, c).astype(f32),
        params["g2"].reshape(1, c).astype(f32), params["b2"].reshape(1, c).astype(f32),
        params["wfc"].astype(bf16), params["bfc"].reshape(1, -1).astype(f32),
        params["wp2"].astype(bf16), params["bp2"].reshape(1, c).astype(f32),
    ]

    out = pl.pallas_call(
        functools.partial(block_kernel, n_batch=b, seq_len=t, n_head=n_head),
        out_shape=jax.ShapeDtypeStruct((b * t, c), jnp.float32),
    )(*args)
    return out.reshape(b, t, c)


gpt2_block_jit = jax.jit(gpt2_block, static_argnums=2)


# ------------------------ pure-JAX reference ----------------------------------
def ref_block(x, p, n_head):
    def ln(h, g, b):
        mu = h.mean(-1, keepdims=True)
        var = ((h - mu) ** 2).mean(-1, keepdims=True)
        return (h - mu) / jnp.sqrt(var + LN_EPS) * g + b

    b, t, c = x.shape
    hd = c // n_head
    h = ln(x, p["g1"], p["b1"])
    qkv = h @ p["wqkv"] + p["bqkv"]
    q, k, v = jnp.split(qkv, 3, axis=-1)

    def sh(u):
        return u.reshape(b, t, n_head, hd).transpose(0, 2, 1, 3)

    q, k, v = sh(q), sh(k), sh(v)
    s = jnp.einsum("bhtd,bhsd->bhts", q, k) / jnp.sqrt(jnp.float32(hd))
    mask = jnp.tril(jnp.ones((t, t), dtype=bool))
    s = jnp.where(mask, s, -jnp.inf)
    a = jax.nn.softmax(s, axis=-1)
    y = jnp.einsum("bhts,bhsd->bhtd", a, v).transpose(0, 2, 1, 3).reshape(b, t, c)
    x1 = x + y @ p["wproj"] + p["bproj"]
    h2 = ln(x1, p["g2"], p["b2"])
    fc = h2 @ p["wfc"] + p["bfc"]
    g = 0.5 * fc * (1.0 + jnp.tanh(GELU_C * (fc + 0.044715 * fc ** 3)))
    return x1 + g @ p["wp2"] + p["bp2"]


# --------------------------------- main ---------------------------------------
if __name__ == "__main__":
    key = jax.random.PRNGKey(0)
    keys = jax.random.split(key, 12)

    params = {
        "g1": 1.0 + 0.02 * jax.random.normal(keys[0], (C,), jnp.float32),
        "b1": 0.02 * jax.random.normal(keys[1], (C,), jnp.float32),
        "wqkv": 0.02 * jax.random.normal(keys[2], (C, 3 * C), jnp.float32),
        "bqkv": 0.02 * jax.random.normal(keys[3], (3 * C,), jnp.float32),
        "wproj": 0.02 * jax.random.normal(keys[4], (C, C), jnp.float32),
        "bproj": 0.02 * jax.random.normal(keys[5], (C,), jnp.float32),
        "g2": 1.0 + 0.02 * jax.random.normal(keys[6], (C,), jnp.float32),
        "b2": 0.02 * jax.random.normal(keys[7], (C,), jnp.float32),
        "wfc": 0.02 * jax.random.normal(keys[8], (C, 4 * C), jnp.float32),
        "bfc": 0.02 * jax.random.normal(keys[9], (4 * C,), jnp.float32),
        "wp2": 0.02 * jax.random.normal(keys[10], (4 * C, C), jnp.float32),
        "bp2": 0.02 * jax.random.normal(keys[11], (C,), jnp.float32),
    }

    x = jax.random.normal(jax.random.PRNGKey(1), (B, T, C), jnp.float32)

    out = gpt2_block_jit(x, params, N_HEAD)
    out = jax.block_until_ready(out)

    ref = ref_block(x, params, N_HEAD)
    assert out.shape == (B, T, C)
    # bf16 matmul inputs + approx reciprocal -> compare at bf16-level tolerance
    assert jnp.allclose(out, ref, atol=1e-2, rtol=1e-2), "mismatch vs reference"

    print("KERNEL_OK")
</pallas_src>

<mosaic_0001>
module attributes {stable_mosaic.version = 11 : i64} {
  func.func @block_kernel(%arg0: memref<16x32xf32, #tpu.memory_space<vmem>>, %arg1: memref<1x32xf32, #tpu.memory_space<vmem>>, %arg2: memref<1x32xf32, #tpu.memory_space<vmem>>, %arg3: memref<4x32x8xbf16, #tpu.memory_space<vmem>>, %arg4: memref<4x1x8xf32, #tpu.memory_space<vmem>>, %arg5: memref<4x32x8xbf16, #tpu.memory_space<vmem>>, %arg6: memref<4x1x8xf32, #tpu.memory_space<vmem>>, %arg7: memref<4x32x8xbf16, #tpu.memory_space<vmem>>, %arg8: memref<4x1x8xf32, #tpu.memory_space<vmem>>, %arg9: memref<4x8x32xbf16, #tpu.memory_space<vmem>>, %arg10: memref<1x32xf32, #tpu.memory_space<vmem>>, %arg11: memref<1x32xf32, #tpu.memory_space<vmem>>, %arg12: memref<1x32xf32, #tpu.memory_space<vmem>>, %arg13: memref<32x128xbf16, #tpu.memory_space<vmem>>, %arg14: memref<1x128xf32, #tpu.memory_space<vmem>>, %arg15: memref<128x32xbf16, #tpu.memory_space<vmem>>, %arg16: memref<1x32xf32, #tpu.memory_space<vmem>>, %arg17: memref<16x32xf32, #tpu.memory_space<vmem>>) attributes {dimension_semantics = [], scalar_prefetch = 0 : i64, scratch_operands = 0 : i64, tpu.core_type = #tpu.core_type<tc>} {
    %c0 = arith.constant 0 : index
    %c0_0 = arith.constant 0 : index
    %0 = vector.load %arg0[%c0, %c0_0] : memref<16x32xf32, #tpu.memory_space<vmem>>, vector<16x32xf32>
    %c0_1 = arith.constant 0 : index
    %c0_2 = arith.constant 0 : index
    %1 = vector.load %arg1[%c0_1, %c0_2] : memref<1x32xf32, #tpu.memory_space<vmem>>, vector<1x32xf32>
    %c0_3 = arith.constant 0 : index
    %c0_4 = arith.constant 0 : index
    %2 = vector.load %arg2[%c0_3, %c0_4] : memref<1x32xf32, #tpu.memory_space<vmem>>, vector<1x32xf32>
    %cst = arith.constant dense<0.000000e+00> : vector<16xf32>
    %3 = vector.multi_reduction <add>, %0, %cst [1] : vector<16x32xf32> to vector<16xf32>
    %4 = vector.shape_cast %3 : vector<16xf32> to vector<16x1xf32>
    %cst_5 = arith.constant 3.200000e+01 : f32
    %5 = vector.broadcast %cst_5 : f32 to vector<16x1xf32>
    %6 = arith.divf %4, %5 : vector<16x1xf32>
    %7 = vector.broadcast %6 : vector<16x1xf32> to vector<16x32xf32>
    %8 = arith.subf %0, %7 : vector<16x32xf32>
    %9 = arith.mulf %8, %8 : vector<16x32xf32>
    %cst_6 = arith.constant dense<0.000000e+00> : vector<16xf32>
    %10 = vector.multi_reduction <add>, %9, %cst_6 [1] : vector<16x32xf32> to vector<16xf32>
    %11 = vector.shape_cast %10 : vector<16xf32> to vector<16x1xf32>
    %cst_7 = arith.constant 3.200000e+01 : f32
    %12 = vector.broadcast %cst_7 : f32 to vector<16x1xf32>
    %13 = arith.divf %11, %12 : vector<16x1xf32>
    %14 = vector.broadcast %6 : vector<16x1xf32> to vector<16x32xf32>
    %15 = arith.subf %0, %14 : vector<16x32xf32>
    %cst_8 = arith.constant 9.99999974E-6 : f32
    %16 = vector.broadcast %cst_8 : f32 to vector<16x1xf32>
    %17 = arith.addf %13, %16 : vector<16x1xf32>
    %18 = math.rsqrt %17 : vector<16x1xf32>
    %19 = vector.broadcast %18 : vector<16x1xf32> to vector<16x32xf32>
    %20 = arith.mulf %15, %19 : vector<16x32xf32>
    %21 = vector.broadcast %1 : vector<1x32xf32> to vector<16x32xf32>
    %22 = arith.mulf %20, %21 : vector<16x32xf32>
    %23 = vector.broadcast %2 : vector<1x32xf32> to vector<16x32xf32>
    %24 = arith.addf %22, %23 : vector<16x32xf32>
    %25 = tpu.iota {dimensions = array<i32: 0>} : vector<8x8xi32>
    %26 = tpu.iota {dimensions = array<i32: 1>} : vector<8x8xi32>
    %27 = arith.cmpi sge, %25, %26 : vector<8x8xi32>
    %28 = vector.extract_strided_slice %24 {offsets = [0, 0], sizes = [8, 32], strides = [1, 1]} : vector<16x32xf32> to vector<8x32xf32>
    %29 = arith.truncf %28 : vector<8x32xf32> to vector<8x32xbf16>
    %cst_9 = arith.constant 0.000000e+00 : f32
    %30 = vector.broadcast %cst_9 : f32 to vector<8x32xf32>
    %c0_10 = arith.constant 0 : index
    %c0_11 = arith.constant 0 : index
    %c0_12 = arith.constant 0 : index
    %31 = vector.load %arg3[%c0_10, %c0_11, %c0_12] : memref<4x32x8xbf16, #tpu.memory_space<vmem>>, vector<1x32x8xbf16>
    %32 = vector.shape_cast %31 : vector<1x32x8xbf16> to vector<32x8xbf16>
    %cst_13 = arith.constant dense<0.000000e+00> : vector<8x8xf32>
    %33 = tpu.matmul %29, %32, %cst_13 {dimension_numbers = #tpu.dot_dimension_numbers<[1], [0], [0], [1], [0, 0, 1, 1], [], []>} : vector<8x32xbf16>, vector<32x8xbf16>, vector<8x8xf32> -> vector<8x8xf32>
    %c0_14 = arith.constant 0 : index
    %c0_15 = arith.constant 0 : index
    %c0_16 = arith.constant 0 : index
    %34 = vector.load %arg4[%c0_14, %c0_15, %c0_16] : memref<4x1x8xf32, #tpu.memory_space<vmem>>, vector<1x1x8xf32>
    %35 = vector.shape_cast %34 : vector<1x1x8xf32> to vector<1x8xf32>
    %36 = vector.broadcast %35 : vector<1x8xf32> to vector<8x8xf32>
    %37 = arith.addf %33, %36 : vector<8x8xf32>
    %c0_17 = arith.constant 0 : index
    %c0_18 = arith.constant 0 : index
    %c0_19 = arith.constant 0 : index
    %38 = vector.load %arg5[%c0_17, %c0_18, %c0_19] : memref<4x32x8xbf16, #tpu.memory_space<vmem>>, vector<1x32x8xbf16>
    %39 = vector.shape_cast %38 : vector<1x32x8xbf16> to vector<32x8xbf16>
    %cst_20 = arith.constant dense<0.000000e+00> : vector<8x8xf32>
    %40 = tpu.matmul %29, %39, %cst_20 {dimension_numbers = #tpu.dot_dimension_numbers<[1], [0], [0], [1], [0, 0, 1, 1], [], []>} : vector<8x32xbf16>, vector<32x8xbf16>, vector<8x8xf32> -> vector<8x8xf32>
    %c0_21 = arith.constant 0 : index
    %c0_22 = arith.constant 0 : index
    %c0_23 = arith.constant 0 : index
    %41 = vector.load %arg6[%c0_21, %c0_22, %c0_23] : memref<4x1x8xf32, #tpu.memory_space<vmem>>, vector<1x1x8xf32>
    %42 = vector.shape_cast %41 : vector<1x1x8xf32> to vector<1x8xf32>
    %43 = vector.broadcast %42 : vector<1x8xf32> to vector<8x8xf32>
    %44 = arith.addf %40, %43 : vector<8x8xf32>
    %c0_24 = arith.constant 0 : index
    %c0_25 = arith.constant 0 : index
    %c0_26 = arith.constant 0 : index
    %45 = vector.load %arg7[%c0_24, %c0_25, %c0_26] : memref<4x32x8xbf16, #tpu.memory_space<vmem>>, vector<1x32x8xbf16>
    %46 = vector.shape_cast %45 : vector<1x32x8xbf16> to vector<32x8xbf16>
    %cst_27 = arith.constant dense<0.000000e+00> : vector<8x8xf32>
    %47 = tpu.matmul %29, %46, %cst_27 {dimension_numbers = #tpu.dot_dimension_numbers<[1], [0], [0], [1], [0, 0, 1, 1], [], []>} : vector<8x32xbf16>, vector<32x8xbf16>, vector<8x8xf32> -> vector<8x8xf32>
    %c0_28 = arith.constant 0 : index
    %c0_29 = arith.constant 0 : index
    %c0_30 = arith.constant 0 : index
    %48 = vector.load %arg8[%c0_28, %c0_29, %c0_30] : memref<4x1x8xf32, #tpu.memory_space<vmem>>, vector<1x1x8xf32>
    %49 = vector.shape_cast %48 : vector<1x1x8xf32> to vector<1x8xf32>
    %50 = vector.broadcast %49 : vector<1x8xf32> to vector<8x8xf32>
    %51 = arith.addf %47, %50 : vector<8x8xf32>
    %52 = arith.truncf %37 : vector<8x8xf32> to vector<8x8xbf16>
    %53 = arith.truncf %44 : vector<8x8xf32> to vector<8x8xbf16>
    %cst_31 = arith.constant dense<0.000000e+00> : vector<8x8xf32>
    %54 = tpu.matmul %52, %53, %cst_31 {dimension_numbers = #tpu.dot_dimension_numbers<[1], [1], [0], [0], [0, 0, 1, 0], [], []>} : vector<8x8xbf16>, vector<8x8xbf16>, vector<8x8xf32> -> vector<8x8xf32>
    %cst_32 = arith.constant -1.000000e+30 : f32
    %55 = vector.broadcast %cst_32 : f32 to vector<8x8xf32>
    %56 = arith.select %27, %54, %55 : vector<8x8xi1>, vector<8x8xf32>
    %cst_33 = arith.constant dense<0xFF800000> : vector<8xf32>
    %57 = vector.multi_reduction <maximumf>, %56, %cst_33 [1] : vector<8x8xf32> to vector<8xf32>
    %58 = vector.shape_cast %57 : vector<8xf32> to vector<8x1xf32>
    %59 = vector.broadcast %58 : vector<8x1xf32> to vector<8x8xf32>
    %60 = arith.subf %56, %59 : vector<8x8xf32>
    %61 = math.exp %60 : vector<8x8xf32>
    %cst_34 = arith.constant dense<0.000000e+00> : vector<8xf32>
    %62 = vector.multi_reduction <add>, %61, %cst_34 [1] : vector<8x8xf32> to vector<8xf32>
    %63 = vector.shape_cast %62 : vector<8xf32> to vector<8x1xf32>
    %64 = tpu.reciprocal %63 {approx = true} : vector<8x1xf32> -> vector<8x1xf32>
    %65 = vector.broadcast %64 : vector<8x1xf32> to vector<8x8xf32>
    %66 = arith.mulf %61, %65 : vector<8x8xf32>
    %67 = arith.truncf %66 : vector<8x8xf32> to vector<8x8xbf16>
    %68 = arith.truncf %51 : vector<8x8xf32> to vector<8x8xbf16>
    %cst_35 = arith.constant dense<0.000000e+00> : vector<8x8xf32>
    %69 = tpu.matmul %67, %68, %cst_35 {dimension_numbers = #tpu.dot_dimension_numbers<[1], [0], [0], [1], [0, 0, 1, 1], [], []>} : vector<8x8xbf16>, vector<8x8xbf16>, vector<8x8xf32> -> vector<8x8xf32>
    %70 = arith.truncf %69 : vector<8x8xf32> to vector<8x8xbf16>
    %c0_36 = arith.constant 0 : index
    %c0_37 = arith.constant 0 : index
    %c0_38 = arith.constant 0 : index
    %71 = vector.load %arg9[%c0_36, %c0_37, %c0_38] : memref<4x8x32xbf16, #tpu.memory_space<vmem>>, vector<1x8x32xbf16>
    %72 = vector.shape_cast %71 : vector<1x8x32xbf16> to vector<8x32xbf16>
    %cst_39 = arith.constant dense<0.000000e+00> : vector<8x32xf32>
    %73 = tpu.matmul %70, %72, %cst_39 {dimension_numbers = #tpu.dot_dimension_numbers<[1], [0], [0], [1], [0, 0, 1, 1], [], []>} : vector<8x8xbf16>, vector<8x32xbf16>, vector<8x32xf32> -> vector<8x32xf32>
    %74 = arith.addf %30, %73 : vector<8x32xf32>
    %c1 = arith.constant 1 : index
    %c0_40 = arith.constant 0 : index
    %c0_41 = arith.constant 0 : index
    %75 = vector.load %arg3[%c1, %c0_40, %c0_41] : memref<4x32x8xbf16, #tpu.memory_space<vmem>>, vector<1x32x8xbf16>
    %76 = vector.shape_cast %75 : vector<1x32x8xbf16> to vector<32x8xbf16>
    %cst_42 = arith.constant dense<0.000000e+00> : vector<8x8xf32>
    %77 = tpu.matmul %29, %76, %cst_42 {dimension_numbers = #tpu.dot_dimension_numbers<[1], [0], [0], [1], [0, 0, 1, 1], [], []>} : vector<8x32xbf16>, vector<32x8xbf16>, vector<8x8xf32> -> vector<8x8xf32>
    %c1_43 = arith.constant 1 : index
    %c0_44 = arith.constant 0 : index
    %c0_45 = arith.constant 0 : index
    %78 = vector.load %arg4[%c1_43, %c0_44, %c0_45] : memref<4x1x8xf32, #tpu.memory_space<vmem>>, vector<1x1x8xf32>
    %79 = vector.shape_cast %78 : vector<1x1x8xf32> to vector<1x8xf32>
    %80 = vector.broadcast %79 : vector<1x8xf32> to vector<8x8xf32>
    %81 = arith.addf %77, %80 : vector<8x8xf32>
    %c1_46 = arith.constant 1 : index
    %c0_47 = arith.constant 0 : index
    %c0_48 = arith.constant 0 : index
    %82 = vector.load %arg5[%c1_46, %c0_47, %c0_48] : memref<4x32x8xbf16, #tpu.memory_space<vmem>>, vector<1x32x8xbf16>
    %83 = vector.shape_cast %82 : vector<1x32x8xbf16> to vector<32x8xbf16>
    %cst_49 = arith.constant dense<0.000000e+00> : vector<8x8xf32>
    %84 = tpu.matmul %29, %83, %cst_49 {dimension_numbers = #tpu.dot_dimension_numbers<[1], [0], [0], [1], [0, 0, 1, 1], [], []>} : vector<8x32xbf16>, vector<32x8xbf16>, vector<8x8xf32> -> vector<8x8xf32>
    %c1_50 = arith.constant 1 : index
    %c0_51 = arith.constant 0 : index
    %c0_52 = arith.constant 0 : index
    %85 = vector.load %arg6[%c1_50, %c0_51, %c0_52] : memref<4x1x8xf32, #tpu.memory_space<vmem>>, vector<1x1x8xf32>
    %86 = vector.shape_cast %85 : vector<1x1x8xf32> to vector<1x8xf32>
    %87 = vector.broadcast %86 : vector<1x8xf32> to vector<8x8xf32>
    %88 = arith.addf %84, %87 : vector<8x8xf32>
    %c1_53 = arith.constant 1 : index
    %c0_54 = arith.constant 0 : index
    %c0_55 = arith.constant 0 : index
    %89 = vector.load %arg7[%c1_53, %c0_54, %c0_55] : memref<4x32x8xbf16, #tpu.memory_space<vmem>>, vector<1x32x8xbf16>
    %90 = vector.shape_cast %89 : vector<1x32x8xbf16> to vector<32x8xbf16>
    %cst_56 = arith.constant dense<0.000000e+00> : vector<8x8xf32>
    %91 = tpu.matmul %29, %90, %cst_56 {dimension_numbers = #tpu.dot_dimension_numbers<[1], [0], [0], [1], [0, 0, 1, 1], [], []>} : vector<8x32xbf16>, vector<32x8xbf16>, vector<8x8xf32> -> vector<8x8xf32>
    %c1_57 = arith.constant 1 : index
    %c0_58 = arith.constant 0 : index
    %c0_59 = arith.constant 0 : index
    %92 = vector.load %arg8[%c1_57, %c0_58, %c0_59] : memref<4x1x8xf32, #tpu.memory_space<vmem>>, vector<1x1x8xf32>
    %93 = vector.shape_cast %92 : vector<1x1x8xf32> to vector<1x8xf32>
    %94 = vector.broadcast %93 : vector<1x8xf32> to vector<8x8xf32>
    %95 = arith.addf %91, %94 : vector<8x8xf32>
    %96 = arith.truncf %81 : vector<8x8xf32> to vector<8x8xbf16>
    %97 = arith.truncf %88 : vector<8x8xf32> to vector<8x8xbf16>
    %cst_60 = arith.constant dense<0.000000e+00> : vector<8x8xf32>
    %98 = tpu.matmul %96, %97, %cst_60 {dimension_numbers = #tpu.dot_dimension_numbers<[1], [1], [0], [0], [0, 0, 1, 0], [], []>} : vector<8x8xbf16>, vector<8x8xbf16>, vector<8x8xf32> -> vector<8x8xf32>
    %cst_61 = arith.constant -1.000000e+30 : f32
    %99 = vector.broadcast %cst_61 : f32 to vector<8x8xf32>
    %100 = arith.select %27, %98, %99 : vector<8x8xi1>, vector<8x8xf32>
    %cst_62 = arith.constant dense<0xFF800000> : vector<8xf32>
    %101 = vector.multi_reduction <maximumf>, %100, %cst_62 [1] : vector<8x8xf32> to vector<8xf32>
    %102 = vector.shape_cast %101 : vector<8xf32> to vector<8x1xf32>
    %103 = vector.broadcast %102 : vector<8x1xf32> to vector<8x8xf32>
    %104 = arith.subf %100, %103 : vector<8x8xf32>
    %105 = math.exp %104 : vector<8x8xf32>
    %cst_63 = arith.constant dense<0.000000e+00> : vector<8xf32>
    %106 = vector.multi_reduction <add>, %105, %cst_63 [1] : vector<8x8xf32> to vector<8xf32>
    %107 = vector.shape_cast %106 : vector<8xf32> to vector<8x1xf32>
    %108 = tpu.reciprocal %107 {approx = true} : vector<8x1xf32> -> vector<8x1xf32>
    %109 = vector.broadcast %108 : vector<8x1xf32> to vector<8x8xf32>
    %110 = arith.mulf %105, %109 : vector<8x8xf32>
    %111 = arith.truncf %110 : vector<8x8xf32> to vector<8x8xbf16>
    %112 = arith.truncf %95 : vector<8x8xf32> to vector<8x8xbf16>
    %cst_64 = arith.constant dense<0.000000e+00> : vector<8x8xf32>
    %113 = tpu.matmul %111, %112, %cst_64 {dimension_numbers = #tpu.dot_dimension_numbers<[1], [0], [0], [1], [0, 0, 1, 1], [], []>} : vector<8x8xbf16>, vector<8x8xbf16>, vector<8x8xf32> -> vector<8x8xf32>
    %114 = arith.truncf %113 : vector<8x8xf32> to vector<8x8xbf16>
    %c1_65 = arith.constant 1 : index
    %c0_66 = arith.constant 0 : index
    %c0_67 = arith.constant 0 : index
    %115 = vector.load %arg9[%c1_65, %c0_66, %c0_67] : memref<4x8x32xbf16, #tpu.memory_space<vmem>>, vector<1x8x32xbf16>
    %116 = vector.shape_cast %115 : vector<1x8x32xbf16> to vector<8x32xbf16>
    %cst_68 = arith.constant dense<0.000000e+00> : vector<8x32xf32>
    %117 = tpu.matmul %114, %116, %cst_68 {dimension_numbers = #tpu.dot_dimension_numbers<[1], [0], [0], [1], [0, 0, 1, 1], [], []>} : vector<8x8xbf16>, vector<8x32xbf16>, vector<8x32xf32> -> vector<8x32xf32>
    %118 = arith.addf %74, %117 : vector<8x32xf32>
    %c2 = arith.constant 2 : index
    %c0_69 = arith.constant 0 : index
    %c0_70 = arith.constant 0 : index
    %119 = vector.load %arg3[%c2, %c0_69, %c0_70] : memref<4x32x8xbf16, #tpu.memory_space<vmem>>, vector<1x32x8xbf16>
    %120 = vector.shape_cast %119 : vector<1x32x8xbf16> to vector<32x8xbf16>
    %cst_71 = arith.constant dense<0.000000e+00> : vector<8x8xf32>
    %121 = tpu.matmul %29, %120, %cst_71 {dimension_numbers = #tpu.dot_dimension_numbers<[1], [0], [0], [1], [0, 0, 1, 1], [], []>} : vector<8x32xbf16>, vector<32x8xbf16>, vector<8x8xf32> -> vector<8x8xf32>
    %c2_72 = arith.constant 2 : index
    %c0_73 = arith.constant 0 : index
    %c0_74 = arith.constant 0 : index
    %122 = vector.load %arg4[%c2_72, %c0_73, %c0_74] : memref<4x1x8xf32, #tpu.memory_space<vmem>>, vector<1x1x8xf32>
    %123 = vector.shape_cast %122 : vector<1x1x8xf32> to vector<1x8xf32>
    %124 = vector.broadcast %123 : vector<1x8xf32> to vector<8x8xf32>
    %125 = arith.addf %121, %124 : vector<8x8xf32>
    %c2_75 = arith.constant 2 : index
    %c0_76 = arith.constant 0 : index
    %c0_77 = arith.constant 0 : index
    %126 = vector.load %arg5[%c2_75, %c0_76, %c0_77] : memref<4x32x8xbf16, #tpu.memory_space<vmem>>, vector<1x32x8xbf16>
    %127 = vector.shape_cast %126 : vector<1x32x8xbf16> to vector<32x8xbf16>
    %cst_78 = arith.constant dense<0.000000e+00> : vector<8x8xf32>
    %128 = tpu.matmul %29, %127, %cst_78 {dimension_numbers = #tpu.dot_dimension_numbers<[1], [0], [0], [1], [0, 0, 1, 1], [], []>} : vector<8x32xbf16>, vector<32x8xbf16>, vector<8x8xf32> -> vector<8x8xf32>
    %c2_79 = arith.constant 2 : index
    %c0_80 = arith.constant 0 : index
    %c0_81 = arith.constant 0 : index
    %129 = vector.load %arg6[%c2_79, %c0_80, %c0_81] : memref<4x1x8xf32, #tpu.memory_space<vmem>>, vector<1x1x8xf32>
    %130 = vector.shape_cast %129 : vector<1x1x8xf32> to vector<1x8xf32>
    %131 = vector.broadcast %130 : vector<1x8xf32> to vector<8x8xf32>
    %132 = arith.addf %128, %131 : vector<8x8xf32>
    %c2_82 = arith.constant 2 : index
    %c0_83 = arith.constant 0 : index
    %c0_84 = arith.constant 0 : index
    %133 = vector.load %arg7[%c2_82, %c0_83, %c0_84] : memref<4x32x8xbf16, #tpu.memory_space<vmem>>, vector<1x32x8xbf16>
    %134 = vector.shape_cast %133 : vector<1x32x8xbf16> to vector<32x8xbf16>
    %cst_85 = arith.constant dense<0.000000e+00> : vector<8x8xf32>
    %135 = tpu.matmul %29, %134, %cst_85 {dimension_numbers = #tpu.dot_dimension_numbers<[1], [0], [0], [1], [0, 0, 1, 1], [], []>} : vector<8x32xbf16>, vector<32x8xbf16>, vector<8x8xf32> -> vector<8x8xf32>
    %c2_86 = arith.constant 2 : index
    %c0_87 = arith.constant 0 : index
    %c0_88 = arith.constant 0 : index
    %136 = vector.load %arg8[%c2_86, %c0_87, %c0_88] : memref<4x1x8xf32, #tpu.memory_space<vmem>>, vector<1x1x8xf32>
    %137 = vector.shape_cast %136 : vector<1x1x8xf32> to vector<1x8xf32>
    %138 = vector.broadcast %137 : vector<1x8xf32> to vector<8x8xf32>
    %139 = arith.addf %135, %138 : vector<8x8xf32>
    %140 = arith.truncf %125 : vector<8x8xf32> to vector<8x8xbf16>
    %141 = arith.truncf %132 : vector<8x8xf32> to vector<8x8xbf16>
    %cst_89 = arith.constant dense<0.000000e+00> : vector<8x8xf32>
    %142 = tpu.matmul %140, %141, %cst_89 {dimension_numbers = #tpu.dot_dimension_numbers<[1], [1], [0], [0], [0, 0, 1, 0], [], []>} : vector<8x8xbf16>, vector<8x8xbf16>, vector<8x8xf32> -> vector<8x8xf32>
    %cst_90 = arith.constant -1.000000e+30 : f32
    %143 = vector.broadcast %cst_90 : f32 to vector<8x8xf32>
    %144 = arith.select %27, %142, %143 : vector<8x8xi1>, vector<8x8xf32>
    %cst_91 = arith.constant dense<0xFF800000> : vector<8xf32>
    %145 = vector.multi_reduction <maximumf>, %144, %cst_91 [1] : vector<8x8xf32> to vector<8xf32>
    %146 = vector.shape_cast %145 : vector<8xf32> to vector<8x1xf32>
    %147 = vector.broadcast %146 : vector<8x1xf32> to vector<8x8xf32>
    %148 = arith.subf %144, %147 : vector<8x8xf32>
    %149 = math.exp %148 : vector<8x8xf32>
    %cst_92 = arith.constant dense<0.000000e+00> : vector<8xf32>
    %150 = vector.multi_reduction <add>, %149, %cst_92 [1] : vector<8x8xf32> to vector<8xf32>
    %151 = vector.shape_cast %150 : vector<8xf32> to vector<8x1xf32>
    %152 = tpu.reciprocal %151 {approx = true} : vector<8x1xf32> -> vector<8x1xf32>
    %153 = vector.broadcast %152 : vector<8x1xf32> to vector<8x8xf32>
    %154 = arith.mulf %149, %153 : vector<8x8xf32>
    %155 = arith.truncf %154 : vector<8x8xf32> to vector<8x8xbf16>
    %156 = arith.truncf %139 : vector<8x8xf32> to vector<8x8xbf16>
    %cst_93 = arith.constant dense<0.000000e+00> : vector<8x8xf32>
    %157 = tpu.matmul %155, %156, %cst_93 {dimension_numbers = #tpu.dot_dimension_numbers<[1], [0], [0], [1], [0, 0, 1, 1], [], []>} : vector<8x8xbf16>, vector<8x8xbf16>, vector<8x8xf32> -> vector<8x8xf32>
    %158 = arith.truncf %157 : vector<8x8xf32> to vector<8x8xbf16>
    %c2_94 = arith.constant 2 : index
    %c0_95 = arith.constant 0 : index
    %c0_96 = arith.constant 0 : index
    %159 = vector.load %arg9[%c2_94, %c0_95, %c0_96] : memref<4x8x32xbf16, #tpu.memory_space<vmem>>, vector<1x8x32xbf16>
    %160 = vector.shape_cast %159 : vector<1x8x32xbf16> to vector<8x32xbf16>
    %cst_97 = arith.constant dense<0.000000e+00> : vector<8x32xf32>
    %161 = tpu.matmul %158, %160, %cst_97 {dimension_numbers = #tpu.dot_dimension_numbers<[1], [0], [0], [1], [0, 0, 1, 1], [], []>} : vector<8x8xbf16>, vector<8x32xbf16>, vector<8x32xf32> -> vector<8x32xf32>
    %162 = arith.addf %118, %161 : vector<8x32xf32>
    %c3 = arith.constant 3 : index
    %c0_98 = arith.constant 0 : index
    %c0_99 = arith.constant 0 : index
    %163 = vector.load %arg3[%c3, %c0_98, %c0_99] : memref<4x32x8xbf16, #tpu.memory_space<vmem>>, vector<1x32x8xbf16>
    %164 = vector.shape_cast %163 : vector<1x32x8xbf16> to vector<32x8xbf16>
    %cst_100 = arith.constant dense<0.000000e+00> : vector<8x8xf32>
    %165 = tpu.matmul %29, %164, %cst_100 {dimension_numbers = #tpu.dot_dimension_numbers<[1], [0], [0], [1], [0, 0, 1, 1], [], []>} : vector<8x32xbf16>, vector<32x8xbf16>, vector<8x8xf32> -> vector<8x8xf32>
    %c3_101 = arith.constant 3 : index
    %c0_102 = arith.constant 0 : index
    %c0_103 = arith.constant 0 : index
    %166 = vector.load %arg4[%c3_101, %c0_102, %c0_103] : memref<4x1x8xf32, #tpu.memory_space<vmem>>, vector<1x1x8xf32>
    %167 = vector.shape_cast %166 : vector<1x1x8xf32> to vector<1x8xf32>
    %168 = vector.broadcast %167 : vector<1x8xf32> to vector<8x8xf32>
    %169 = arith.addf %165, %168 : vector<8x8xf32>
    %c3_104 = arith.constant 3 : index
    %c0_105 = arith.constant 0 : index
    %c0_106 = arith.constant 0 : index
    %170 = vector.load %arg5[%c3_104, %c0_105, %c0_106] : memref<4x32x8xbf16, #tpu.memory_space<vmem>>, vector<1x32x8xbf16>
    %171 = vector.shape_cast %170 : vector<1x32x8xbf16> to vector<32x8xbf16>
    %cst_107 = arith.constant dense<0.000000e+00> : vector<8x8xf32>
    %172 = tpu.matmul %29, %171, %cst_107 {dimension_numbers = #tpu.dot_dimension_numbers<[1], [0], [0], [1], [0, 0, 1, 1], [], []>} : vector<8x32xbf16>, vector<32x8xbf16>, vector<8x8xf32> -> vector<8x8xf32>
    %c3_108 = arith.constant 3 : index
    %c0_109 = arith.constant 0 : index
    %c0_110 = arith.constant 0 : index
    %173 = vector.load %arg6[%c3_108, %c0_109, %c0_110] : memref<4x1x8xf32, #tpu.memory_space<vmem>>, vector<1x1x8xf32>
    %174 = vector.shape_cast %173 : vector<1x1x8xf32> to vector<1x8xf32>
    %175 = vector.broadcast %174 : vector<1x8xf32> to vector<8x8xf32>
    %176 = arith.addf %172, %175 : vector<8x8xf32>
    %c3_111 = arith.constant 3 : index
    %c0_112 = arith.constant 0 : index
    %c0_113 = arith.constant 0 : index
    %177 = vector.load %arg7[%c3_111, %c0_112, %c0_113] : memref<4x32x8xbf16, #tpu.memory_space<vmem>>, vector<1x32x8xbf16>
    %178 = vector.shape_cast %177 : vector<1x32x8xbf16> to vector<32x8xbf16>
    %cst_114 = arith.constant dense<0.000000e+00> : vector<8x8xf32>
    %179 = tpu.matmul %29, %178, %cst_114 {dimension_numbers = #tpu.dot_dimension_numbers<[1], [0], [0], [1], [0, 0, 1, 1], [], []>} : vector<8x32xbf16>, vector<32x8xbf16>, vector<8x8xf32> -> vector<8x8xf32>
    %c3_115 = arith.constant 3 : index
    %c0_116 = arith.constant 0 : index
    %c0_117 = arith.constant 0 : index
    %180 = vector.load %arg8[%c3_115, %c0_116, %c0_117] : memref<4x1x8xf32, #tpu.memory_space<vmem>>, vector<1x1x8xf32>
    %181 = vector.shape_cast %180 : vector<1x1x8xf32> to vector<1x8xf32>
    %182 = vector.broadcast %181 : vector<1x8xf32> to vector<8x8xf32>
    %183 = arith.addf %179, %182 : vector<8x8xf32>
    %184 = arith.truncf %169 : vector<8x8xf32> to vector<8x8xbf16>
    %185 = arith.truncf %176 : vector<8x8xf32> to vector<8x8xbf16>
    %cst_118 = arith.constant dense<0.000000e+00> : vector<8x8xf32>
    %186 = tpu.matmul %184, %185, %cst_118 {dimension_numbers = #tpu.dot_dimension_numbers<[1], [1], [0], [0], [0, 0, 1, 0], [], []>} : vector<8x8xbf16>, vector<8x8xbf16>, vector<8x8xf32> -> vector<8x8xf32>
    %cst_119 = arith.constant -1.000000e+30 : f32
    %187 = vector.broadcast %cst_119 : f32 to vector<8x8xf32>
    %188 = arith.select %27, %186, %187 : vector<8x8xi1>, vector<8x8xf32>
    %cst_120 = arith.constant dense<0xFF800000> : vector<8xf32>
    %189 = vector.multi_reduction <maximumf>, %188, %cst_120 [1] : vector<8x8xf32> to vector<8xf32>
    %190 = vector.shape_cast %189 : vector<8xf32> to vector<8x1xf32>
    %191 = vector.broadcast %190 : vector<8x1xf32> to vector<8x8xf32>
    %192 = arith.subf %188, %191 : vector<8x8xf32>
    %193 = math.exp %192 : vector<8x8xf32>
    %cst_121 = arith.constant dense<0.000000e+00> : vector<8xf32>
    %194 = vector.multi_reduction <add>, %193, %cst_121 [1] : vector<8x8xf32> to vector<8xf32>
    %195 = vector.shape_cast %194 : vector<8xf32> to vector<8x1xf32>
    %196 = tpu.reciprocal %195 {approx = true} : vector<8x1xf32> -> vector<8x1xf32>
    %197 = vector.broadcast %196 : vector<8x1xf32> to vector<8x8xf32>
    %198 = arith.mulf %193, %197 : vector<8x8xf32>
    %199 = arith.truncf %198 : vector<8x8xf32> to vector<8x8xbf16>
    %200 = arith.truncf %183 : vector<8x8xf32> to vector<8x8xbf16>
    %cst_122 = arith.constant dense<0.000000e+00> : vector<8x8xf32>
    %201 = tpu.matmul %199, %200, %cst_122 {dimension_numbers = #tpu.dot_dimension_numbers<[1], [0], [0], [1], [0, 0, 1, 1], [], []>} : vector<8x8xbf16>, vector<8x8xbf16>, vector<8x8xf32> -> vector<8x8xf32>
    %202 = arith.truncf %201 : vector<8x8xf32> to vector<8x8xbf16>
    %c3_123 = arith.constant 3 : index
    %c0_124 = arith.constant 0 : index
    %c0_125 = arith.constant 0 : index
    %203 = vector.load %arg9[%c3_123, %c0_124, %c0_125] : memref<4x8x32xbf16, #tpu.memory_space<vmem>>, vector<1x8x32xbf16>
    %204 = vector.shape_cast %203 : vector<1x8x32xbf16> to vector<8x32xbf16>
    %cst_126 = arith.constant dense<0.000000e+00> : vector<8x32xf32>
    %205 = tpu.matmul %202, %204, %cst_126 {dimension_numbers = #tpu.dot_dimension_numbers<[1], [0], [0], [1], [0, 0, 1, 1], [], []>} : vector<8x8xbf16>, vector<8x32xbf16>, vector<8x32xf32> -> vector<8x32xf32>
    %206 = arith.addf %162, %205 : vector<8x32xf32>
    %207 = vector.extract_strided_slice %24 {offsets = [8, 0], sizes = [8, 32], strides = [1, 1]} : vector<16x32xf32> to vector<8x32xf32>
    %208 = arith.truncf %207 : vector<8x32xf32> to vector<8x32xbf16>
    %cst_127 = arith.constant 0.000000e+00 : f32
    %209 = vector.broadcast %cst_127 : f32 to vector<8x32xf32>
    %c0_128 = arith.constant 0 : index
    %c0_129 = arith.constant 0 : index
    %c0_130 = arith.constant 0 : index
    %210 = vector.load %arg3[%c0_128, %c0_129, %c0_130] : memref<4x32x8xbf16, #tpu.memory_space<vmem>>, vector<1x32x8xbf16>
    %211 = vector.shape_cast %210 : vector<1x32x8xbf16> to vector<32x8xbf16>
    %cst_131 = arith.constant dense<0.000000e+00> : vector<8x8xf32>
    %212 = tpu.matmul %208, %211, %cst_131 {dimension_numbers = #tpu.dot_dimension_numbers<[1], [0], [0], [1], [0, 0, 1, 1], [], []>} : vector<8x32xbf16>, vector<32x8xbf16>, vector<8x8xf32> -> vector<8x8xf32>
    %c0_132 = arith.constant 0 : index
    %c0_133 = arith.constant 0 : index
    %c0_134 = arith.constant 0 : index
    %213 = vector.load %arg4[%c0_132, %c0_133, %c0_134] : memref<4x1x8xf32, #tpu.memory_space<vmem>>, vector<1x1x8xf32>
    %214 = vector.shape_cast %213 : vector<1x1x8xf32> to vector<1x8xf32>
    %215 = vector.broadcast %214 : vector<1x8xf32> to vector<8x8xf32>
    %216 = arith.addf %212, %215 : vector<8x8xf32>
    %c0_135 = arith.constant 0 : index
    %c0_136 = arith.constant 0 : index
    %c0_137 = arith.constant 0 : index
    %217 = vector.load %arg5[%c0_135, %c0_136, %c0_137] : memref<4x32x8xbf16, #tpu.memory_space<vmem>>, vector<1x32x8xbf16>
    %218 = vector.shape_cast %217 : vector<1x32x8xbf16> to vector<32x8xbf16>
    %cst_138 = arith.constant dense<0.000000e+00> : vector<8x8xf32>
    %219 = tpu.matmul %208, %218, %cst_138 {dimension_numbers = #tpu.dot_dimension_numbers<[1], [0], [0], [1], [0, 0, 1, 1], [], []>} : vector<8x32xbf16>, vector<32x8xbf16>, vector<8x8xf32> -> vector<8x8xf32>
    %c0_139 = arith.constant 0 : index
    %c0_140 = arith.constant 0 : index
    %c0_141 = arith.constant 0 : index
    %220 = vector.load %arg6[%c0_139, %c0_140, %c0_141] : memref<4x1x8xf32, #tpu.memory_space<vmem>>, vector<1x1x8xf32>
    %221 = vector.shape_cast %220 : vector<1x1x8xf32> to vector<1x8xf32>
    %222 = vector.broadcast %221 : vector<1x8xf32> to vector<8x8xf32>
    %223 = arith.addf %219, %222 : vector<8x8xf32>
    %c0_142 = arith.constant 0 : index
    %c0_143 = arith.constant 0 : index
    %c0_144 = arith.constant 0 : index
    %224 = vector.load %arg7[%c0_142, %c0_143, %c0_144] : memref<4x32x8xbf16, #tpu.memory_space<vmem>>, vector<1x32x8xbf16>
    %225 = vector.shape_cast %224 : vector<1x32x8xbf16> to vector<32x8xbf16>
    %cst_145 = arith.constant dense<0.000000e+00> : vector<8x8xf32>
    %226 = tpu.matmul %208, %225, %cst_145 {dimension_numbers = #tpu.dot_dimension_numbers<[1], [0], [0], [1], [0, 0, 1, 1], [], []>} : vector<8x32xbf16>, vector<32x8xbf16>, vector<8x8xf32> -> vector<8x8xf32>
    %c0_146 = arith.constant 0 : index
    %c0_147 = arith.constant 0 : index
    %c0_148 = arith.constant 0 : index
    %227 = vector.load %arg8[%c0_146, %c0_147, %c0_148] : memref<4x1x8xf32, #tpu.memory_space<vmem>>, vector<1x1x8xf32>
    %228 = vector.shape_cast %227 : vector<1x1x8xf32> to vector<1x8xf32>
    %229 = vector.broadcast %228 : vector<1x8xf32> to vector<8x8xf32>
    %230 = arith.addf %226, %229 : vector<8x8xf32>
    %231 = arith.truncf %216 : vector<8x8xf32> to vector<8x8xbf16>
    %232 = arith.truncf %223 : vector<8x8xf32> to vector<8x8xbf16>
    %cst_149 = arith.constant dense<0.000000e+00> : vector<8x8xf32>
    %233 = tpu.matmul %231, %232, %cst_149 {dimension_numbers = #tpu.dot_dimension_numbers<[1], [1], [0], [0], [0, 0, 1, 0], [], []>} : vector<8x8xbf16>, vector<8x8xbf16>, vector<8x8xf32> -> vector<8x8xf32>
    %cst_150 = arith.constant -1.000000e+30 : f32
    %234 = vector.broadcast %cst_150 : f32 to vector<8x8xf32>
    %235 = arith.select %27, %233, %234 : vector<8x8xi1>, vector<8x8xf32>
    %cst_151 = arith.constant dense<0xFF800000> : vector<8xf32>
    %236 = vector.multi_reduction <maximumf>, %235, %cst_151 [1] : vector<8x8xf32> to vector<8xf32>
    %237 = vector.shape_cast %236 : vector<8xf32> to vector<8x1xf32>
    %238 = vector.broadcast %237 : vector<8x1xf32> to vector<8x8xf32>
    %239 = arith.subf %235, %238 : vector<8x8xf32>
    %240 = math.exp %239 : vector<8x8xf32>
    %cst_152 = arith.constant dense<0.000000e+00> : vector<8xf32>
    %241 = vector.multi_reduction <add>, %240, %cst_152 [1] : vector<8x8xf32> to vector<8xf32>
    %242 = vector.shape_cast %241 : vector<8xf32> to vector<8x1xf32>
    %243 = tpu.reciprocal %242 {approx = true} : vector<8x1xf32> -> vector<8x1xf32>
    %244 = vector.broadcast %243 : vector<8x1xf32> to vector<8x8xf32>
    %245 = arith.mulf %240, %244 : vector<8x8xf32>
    %246 = arith.truncf %245 : vector<8x8xf32> to vector<8x8xbf16>
    %247 = arith.truncf %230 : vector<8x8xf32> to vector<8x8xbf16>
    %cst_153 = arith.constant dense<0.000000e+00> : vector<8x8xf32>
    %248 = tpu.matmul %246, %247, %cst_153 {dimension_numbers = #tpu.dot_dimension_numbers<[1], [0], [0], [1], [0, 0, 1, 1], [], []>} : vector<8x8xbf16>, vector<8x8xbf16>, vector<8x8xf32> -> vector<8x8xf32>
    %249 = arith.truncf %248 : vector<8x8xf32> to vector<8x8xbf16>
    %c0_154 = arith.constant 0 : index
    %c0_155 = arith.constant 0 : index
    %c0_156 = arith.constant 0 : index
    %250 = vector.load %arg9[%c0_154, %c0_155, %c0_156] : memref<4x8x32xbf16, #tpu.memory_space<vmem>>, vector<1x8x32xbf16>
    %251 = vector.shape_cast %250 : vector<1x8x32xbf16> to vector<8x32xbf16>
    %cst_157 = arith.constant dense<0.000000e+00> : vector<8x32xf32>
    %252 = tpu.matmul %249, %251, %cst_157 {dimension_numbers = #tpu.dot_dimension_numbers<[1], [0], [0], [1], [0, 0, 1, 1], [], []>} : vector<8x8xbf16>, vector<8x32xbf16>, vector<8x32xf32> -> vector<8x32xf32>
    %253 = arith.addf %209, %252 : vector<8x32xf32>
    %c1_158 = arith.constant 1 : index
    %c0_159 = arith.constant 0 : index
    %c0_160 = arith.constant 0 : index
    %254 = vector.load %arg3[%c1_158, %c0_159, %c0_160] : memref<4x32x8xbf16, #tpu.memory_space<vmem>>, vector<1x32x8xbf16>
    %255 = vector.shape_cast %254 : vector<1x32x8xbf16> to vector<32x8xbf16>
    %cst_161 = arith.constant dense<0.000000e+00> : vector<8x8xf32>
    %256 = tpu.matmul %208, %255, %cst_161 {dimension_numbers = #tpu.dot_dimension_numbers<[1], [0], [0], [1], [0, 0, 1, 1], [], []>} : vector<8x32xbf16>, vector<32x8xbf16>, vector<8x8xf32> -> vector<8x8xf32>
    %c1_162 = arith.constant 1 : index
    %c0_163 = arith.constant 0 : index
    %c0_164 = arith.constant 0 : index
    %257 = vector.load %arg4[%c1_162, %c0_163, %c0_164] : memref<4x1x8xf32, #tpu.memory_space<vmem>>, vector<1x1x8xf32>
    %258 = vector.shape_cast %257 : vector<1x1x8xf32> to vector<1x8xf32>
    %259 = vector.broadcast %258 : vector<1x8xf32> to vector<8x8xf32>
    %260 = arith.addf %256, %259 : vector<8x8xf32>
    %c1_165 = arith.constant 1 : index
    %c0_166 = arith.constant 0 : index
    %c0_167 = arith.constant 0 : index
    %261 = vector.load %arg5[%c1_165, %c0_166, %c0_167] : memref<4x32x8xbf16, #tpu.memory_space<vmem>>, vector<1x32x8xbf16>
    %262 = vector.shape_cast %261 : vector<1x32x8xbf16> to vector<32x8xbf16>
    %cst_168 = arith.constant dense<0.000000e+00> : vector<8x8xf32>
    %263 = tpu.matmul %208, %262, %cst_168 {dimension_numbers = #tpu.dot_dimension_numbers<[1], [0], [0], [1], [0, 0, 1, 1], [], []>} : vector<8x32xbf16>, vector<32x8xbf16>, vector<8x8xf32> -> vector<8x8xf32>
    %c1_169 = arith.constant 1 : index
    %c0_170 = arith.constant 0 : index
    %c0_171 = arith.constant 0 : index
    %264 = vector.load %arg6[%c1_169, %c0_170, %c0_171] : memref<4x1x8xf32, #tpu.memory_space<vmem>>, vector<1x1x8xf32>
    %265 = vector.shape_cast %264 : vector<1x1x8xf32> to vector<1x8xf32>
    %266 = vector.broadcast %265 : vector<1x8xf32> to vector<8x8xf32>
    %267 = arith.addf %263, %266 : vector<8x8xf32>
    %c1_172 = arith.constant 1 : index
    %c0_173 = arith.constant 0 : index
    %c0_174 = arith.constant 0 : index
    %268 = vector.load %arg7[%c1_172, %c0_173, %c0_174] : memref<4x32x8xbf16, #tpu.memory_space<vmem>>, vector<1x32x8xbf16>
    %269 = vector.shape_cast %268 : vector<1x32x8xbf16> to vector<32x8xbf16>
    %cst_175 = arith.constant dense<0.000000e+00> : vector<8x8xf32>
    %270 = tpu.matmul %208, %269, %cst_175 {dimension_numbers = #tpu.dot_dimension_numbers<[1], [0], [0], [1], [0, 0, 1, 1], [], []>} : vector<8x32xbf16>, vector<32x8xbf16>, vector<8x8xf32> -> vector<8x8xf32>
    %c1_176 = arith.constant 1 : index
    %c0_177 = arith.constant 0 : index
    %c0_178 = arith.constant 0 : index
    %271 = vector.load %arg8[%c1_176, %c0_177, %c0_178] : memref<4x1x8xf32, #tpu.memory_space<vmem>>, vector<1x1x8xf32>
    %272 = vector.shape_cast %271 : vector<1x1x8xf32> to vector<1x8xf32>
    %273 = vector.broadcast %272 : vector<1x8xf32> to vector<8x8xf32>
    %274 = arith.addf %270, %273 : vector<8x8xf32>
    %275 = arith.truncf %260 : vector<8x8xf32> to vector<8x8xbf16>
    %276 = arith.truncf %267 : vector<8x8xf32> to vector<8x8xbf16>
    %cst_179 = arith.constant dense<0.000000e+00> : vector<8x8xf32>
    %277 = tpu.matmul %275, %276, %cst_179 {dimension_numbers = #tpu.dot_dimension_numbers<[1], [1], [0], [0], [0, 0, 1, 0], [], []>} : vector<8x8xbf16>, vector<8x8xbf16>, vector<8x8xf32> -> vector<8x8xf32>
    %cst_180 = arith.constant -1.000000e+30 : f32
    %278 = vector.broadcast %cst_180 : f32 to vector<8x8xf32>
    %279 = arith.select %27, %277, %278 : vector<8x8xi1>, vector<8x8xf32>
    %cst_181 = arith.constant dense<0xFF800000> : vector<8xf32>
    %280 = vector.multi_reduction <maximumf>, %279, %cst_181 [1] : vector<8x8xf32> to vector<8xf32>
    %281 = vector.shape_cast %280 : vector<8xf32> to vector<8x1xf32>
    %282 = vector.broadcast %281 : vector<8x1xf32> to vector<8x8xf32>
    %283 = arith.subf %279, %282 : vector<8x8xf32>
    %284 = math.exp %283 : vector<8x8xf32>
    %cst_182 = arith.constant dense<0.000000e+00> : vector<8xf32>
    %285 = vector.multi_reduction <add>, %284, %cst_182 [1] : vector<8x8xf32> to vector<8xf32>
    %286 = vector.shape_cast %285 : vector<8xf32> to vector<8x1xf32>
    %287 = tpu.reciprocal %286 {approx = true} : vector<8x1xf32> -> vector<8x1xf32>
    %288 = vector.broadcast %287 : vector<8x1xf32> to vector<8x8xf32>
    %289 = arith.mulf %284, %288 : vector<8x8xf32>
    %290 = arith.truncf %289 : vector<8x8xf32> to vector<8x8xbf16>
    %291 = arith.truncf %274 : vector<8x8xf32> to vector<8x8xbf16>
    %cst_183 = arith.constant dense<0.000000e+00> : vector<8x8xf32>
    %292 = tpu.matmul %290, %291, %cst_183 {dimension_numbers = #tpu.dot_dimension_numbers<[1], [0], [0], [1], [0, 0, 1, 1], [], []>} : vector<8x8xbf16>, vector<8x8xbf16>, vector<8x8xf32> -> vector<8x8xf32>
    %293 = arith.truncf %292 : vector<8x8xf32> to vector<8x8xbf16>
    %c1_184 = arith.constant 1 : index
    %c0_185 = arith.constant 0 : index
    %c0_186 = arith.constant 0 : index
    %294 = vector.load %arg9[%c1_184, %c0_185, %c0_186] : memref<4x8x32xbf16, #tpu.memory_space<vmem>>, vector<1x8x32xbf16>
    %295 = vector.shape_cast %294 : vector<1x8x32xbf16> to vector<8x32xbf16>
    %cst_187 = arith.constant dense<0.000000e+00> : vector<8x32xf32>
    %296 = tpu.matmul %293, %295, %cst_187 {dimension_numbers = #tpu.dot_dimension_numbers<[1], [0], [0], [1], [0, 0, 1, 1], [], []>} : vector<8x8xbf16>, vector<8x32xbf16>, vector<8x32xf32> -> vector<8x32xf32>
    %297 = arith.addf %253, %296 : vector<8x32xf32>
    %c2_188 = arith.constant 2 : index
    %c0_189 = arith.constant 0 : index
    %c0_190 = arith.constant 0 : index
    %298 = vector.load %arg3[%c2_188, %c0_189, %c0_190] : memref<4x32x8xbf16, #tpu.memory_space<vmem>>, vector<1x32x8xbf16>
    %299 = vector.shape_cast %298 : vector<1x32x8xbf16> to vector<32x8xbf16>
    %cst_191 = arith.constant dense<0.000000e+00> : vector<8x8xf32>
    %300 = tpu.matmul %208, %299, %cst_191 {dimension_numbers = #tpu.dot_dimension_numbers<[1], [0], [0], [1], [0, 0, 1, 1], [], []>} : vector<8x32xbf16>, vector<32x8xbf16>, vector<8x8xf32> -> vector<8x8xf32>
    %c2_192 = arith.constant 2 : index
    %c0_193 = arith.constant 0 : index
    %c0_194 = arith.constant 0 : index
    %301 = vector.load %arg4[%c2_192, %c0_193, %c0_194] : memref<4x1x8xf32, #tpu.memory_space<vmem>>, vector<1x1x8xf32>
    %302 = vector.shape_cast %301 : vector<1x1x8xf32> to vector<1x8xf32>
    %303 = vector.broadcast %302 : vector<1x8xf32> to vector<8x8xf32>
    %304 = arith.addf %300, %303 : vector<8x8xf32>
    %c2_195 = arith.constant 2 : index
    %c0_196 = arith.constant 0 : index
    %c0_197 = arith.constant 0 : index
    %305 = vector.load %arg5[%c2_195, %c0_196, %c0_197] : memref<4x32x8xbf16, #tpu.memory_space<vmem>>, vector<1x32x8xbf16>
    %306 = vector.shape_cast %305 : vector<1x32x8xbf16> to vector<32x8xbf16>
    %cst_198 = arith.constant dense<0.000000e+00> : vector<8x8xf32>
    %307 = tpu.matmul %208, %306, %cst_198 {dimension_numbers = #tpu.dot_dimension_numbers<[1], [0], [0], [1], [0, 0, 1, 1], [], []>} : vector<8x32xbf16>, vector<32x8xbf16>, vector<8x8xf32> -> vector<8x8xf32>
    %c2_199 = arith.constant 2 : index
    %c0_200 = arith.constant 0 : index
    %c0_201 = arith.constant 0 : index
    %308 = vector.load %arg6[%c2_199, %c0_200, %c0_201] : memref<4x1x8xf32, #tpu.memory_space<vmem>>, vector<1x1x8xf32>
    %309 = vector.shape_cast %308 : vector<1x1x8xf32> to vector<1x8xf32>
    %310 = vector.broadcast %309 : vector<1x8xf32> to vector<8x8xf32>
    %311 = arith.addf %307, %310 : vector<8x8xf32>
    %c2_202 = arith.constant 2 : index
    %c0_203 = arith.constant 0 : index
    %c0_204 = arith.constant 0 : index
    %312 = vector.load %arg7[%c2_202, %c0_203, %c0_204] : memref<4x32x8xbf16, #tpu.memory_space<vmem>>, vector<1x32x8xbf16>
    %313 = vector.shape_cast %312 : vector<1x32x8xbf16> to vector<32x8xbf16>
    %cst_205 = arith.constant dense<0.000000e+00> : vector<8x8xf32>
    %314 = tpu.matmul %208, %313, %cst_205 {dimension_numbers = #tpu.dot_dimension_numbers<[1], [0], [0], [1], [0, 0, 1, 1], [], []>} : vector<8x32xbf16>, vector<32x8xbf16>, vector<8x8xf32> -> vector<8x8xf32>
    %c2_206 = arith.constant 2 : index
    %c0_207 = arith.constant 0 : index
    %c0_208 = arith.constant 0 : index
    %315 = vector.load %arg8[%c2_206, %c0_207, %c0_208] : memref<4x1x8xf32, #tpu.memory_space<vmem>>, vector<1x1x8xf32>
    %316 = vector.shape_cast %315 : vector<1x1x8xf32> to vector<1x8xf32>
    %317 = vector.broadcast %316 : vector<1x8xf32> to vector<8x8xf32>
    %318 = arith.addf %314, %317 : vector<8x8xf32>
    %319 = arith.truncf %304 : vector<8x8xf32> to vector<8x8xbf16>
    %320 = arith.truncf %311 : vector<8x8xf32> to vector<8x8xbf16>
    %cst_209 = arith.constant dense<0.000000e+00> : vector<8x8xf32>
    %321 = tpu.matmul %319, %320, %cst_209 {dimension_numbers = #tpu.dot_dimension_numbers<[1], [1], [0], [0], [0, 0, 1, 0], [], []>} : vector<8x8xbf16>, vector<8x8xbf16>, vector<8x8xf32> -> vector<8x8xf32>
    %cst_210 = arith.constant -1.000000e+30 : f32
    %322 = vector.broadcast %cst_210 : f32 to vector<8x8xf32>
    %323 = arith.select %27, %321, %322 : vector<8x8xi1>, vector<8x8xf32>
    %cst_211 = arith.constant dense<0xFF800000> : vector<8xf32>
    %324 = vector.multi_reduction <maximumf>, %323, %cst_211 [1] : vector<8x8xf32> to vector<8xf32>
    %325 = vector.shape_cast %324 : vector<8xf32> to vector<8x1xf32>
    %326 = vector.broadcast %325 : vector<8x1xf32> to vector<8x8xf32>
    %327 = arith.subf %323, %326 : vector<8x8xf32>
    %328 = math.exp %327 : vector<8x8xf32>
    %cst_212 = arith.constant dense<0.000000e+00> : vector<8xf32>
    %329 = vector.multi_reduction <add>, %328, %cst_212 [1] : vector<8x8xf32> to vector<8xf32>
    %330 = vector.shape_cast %329 : vector<8xf32> to vector<8x1xf32>
    %331 = tpu.reciprocal %330 {approx = true} : vector<8x1xf32> -> vector<8x1xf32>
    %332 = vector.broadcast %331 : vector<8x1xf32> to vector<8x8xf32>
    %333 = arith.mulf %328, %332 : vector<8x8xf32>
    %334 = arith.truncf %333 : vector<8x8xf32> to vector<8x8xbf16>
    %335 = arith.truncf %318 : vector<8x8xf32> to vector<8x8xbf16>
    %cst_213 = arith.constant dense<0.000000e+00> : vector<8x8xf32>
    %336 = tpu.matmul %334, %335, %cst_213 {dimension_numbers = #tpu.dot_dimension_numbers<[1], [0], [0], [1], [0, 0, 1, 1], [], []>} : vector<8x8xbf16>, vector<8x8xbf16>, vector<8x8xf32> -> vector<8x8xf32>
    %337 = arith.truncf %336 : vector<8x8xf32> to vector<8x8xbf16>
    %c2_214 = arith.constant 2 : index
    %c0_215 = arith.constant 0 : index
    %c0_216 = arith.constant 0 : index
    %338 = vector.load %arg9[%c2_214, %c0_215, %c0_216] : memref<4x8x32xbf16, #tpu.memory_space<vmem>>, vector<1x8x32xbf16>
    %339 = vector.shape_cast %338 : vector<1x8x32xbf16> to vector<8x32xbf16>
    %cst_217 = arith.constant dense<0.000000e+00> : vector<8x32xf32>
    %340 = tpu.matmul %337, %339, %cst_217 {dimension_numbers = #tpu.dot_dimension_numbers<[1], [0], [0], [1], [0, 0, 1, 1], [], []>} : vector<8x8xbf16>, vector<8x32xbf16>, vector<8x32xf32> -> vector<8x32xf32>
    %341 = arith.addf %297, %340 : vector<8x32xf32>
    %c3_218 = arith.constant 3 : index
    %c0_219 = arith.constant 0 : index
    %c0_220 = arith.constant 0 : index
    %342 = vector.load %arg3[%c3_218, %c0_219, %c0_220] : memref<4x32x8xbf16, #tpu.memory_space<vmem>>, vector<1x32x8xbf16>
    %343 = vector.shape_cast %342 : vector<1x32x8xbf16> to vector<32x8xbf16>
    %cst_221 = arith.constant dense<0.000000e+00> : vector<8x8xf32>
    %344 = tpu.matmul %208, %343, %cst_221 {dimension_numbers = #tpu.dot_dimension_numbers<[1], [0], [0], [1], [0, 0, 1, 1], [], []>} : vector<8x32xbf16>, vector<32x8xbf16>, vector<8x8xf32> -> vector<8x8xf32>
    %c3_222 = arith.constant 3 : index
    %c0_223 = arith.constant 0 : index
    %c0_224 = arith.constant 0 : index
    %345 = vector.load %arg4[%c3_222, %c0_223, %c0_224] : memref<4x1x8xf32, #tpu.memory_space<vmem>>, vector<1x1x8xf32>
    %346 = vector.shape_cast %345 : vector<1x1x8xf32> to vector<1x8xf32>
    %347 = vector.broadcast %346 : vector<1x8xf32> to vector<8x8xf32>
    %348 = arith.addf %344, %347 : vector<8x8xf32>
    %c3_225 = arith.constant 3 : index
    %c0_226 = arith.constant 0 : index
    %c0_227 = arith.constant 0 : index
    %349 = vector.load %arg5[%c3_225, %c0_226, %c0_227] : memref<4x32x8xbf16, #tpu.memory_space<vmem>>, vector<1x32x8xbf16>
    %350 = vector.shape_cast %349 : vector<1x32x8xbf16> to vector<32x8xbf16>
    %cst_228 = arith.constant dense<0.000000e+00> : vector<8x8xf32>
    %351 = tpu.matmul %208, %350, %cst_228 {dimension_numbers = #tpu.dot_dimension_numbers<[1], [0], [0], [1], [0, 0, 1, 1], [], []>} : vector<8x32xbf16>, vector<32x8xbf16>, vector<8x8xf32> -> vector<8x8xf32>
    %c3_229 = arith.constant 3 : index
    %c0_230 = arith.constant 0 : index
    %c0_231 = arith.constant 0 : index
    %352 = vector.load %arg6[%c3_229, %c0_230, %c0_231] : memref<4x1x8xf32, #tpu.memory_space<vmem>>, vector<1x1x8xf32>
    %353 = vector.shape_cast %352 : vector<1x1x8xf32> to vector<1x8xf32>
    %354 = vector.broadcast %353 : vector<1x8xf32> to vector<8x8xf32>
    %355 = arith.addf %351, %354 : vector<8x8xf32>
    %c3_232 = arith.constant 3 : index
    %c0_233 = arith.constant 0 : index
    %c0_234 = arith.constant 0 : index
    %356 = vector.load %arg7[%c3_232, %c0_233, %c0_234] : memref<4x32x8xbf16, #tpu.memory_space<vmem>>, vector<1x32x8xbf16>
    %357 = vector.shape_cast %356 : vector<1x32x8xbf16> to vector<32x8xbf16>
    %cst_235 = arith.constant dense<0.000000e+00> : vector<8x8xf32>
    %358 = tpu.matmul %208, %357, %cst_235 {dimension_numbers = #tpu.dot_dimension_numbers<[1], [0], [0], [1], [0, 0, 1, 1], [], []>} : vector<8x32xbf16>, vector<32x8xbf16>, vector<8x8xf32> -> vector<8x8xf32>
    %c3_236 = arith.constant 3 : index
    %c0_237 = arith.constant 0 : index
    %c0_238 = arith.constant 0 : index
    %359 = vector.load %arg8[%c3_236, %c0_237, %c0_238] : memref<4x1x8xf32, #tpu.memory_space<vmem>>, vector<1x1x8xf32>
    %360 = vector.shape_cast %359 : vector<1x1x8xf32> to vector<1x8xf32>
    %361 = vector.broadcast %360 : vector<1x8xf32> to vector<8x8xf32>
    %362 = arith.addf %358, %361 : vector<8x8xf32>
    %363 = arith.truncf %348 : vector<8x8xf32> to vector<8x8xbf16>
    %364 = arith.truncf %355 : vector<8x8xf32> to vector<8x8xbf16>
    %cst_239 = arith.constant dense<0.000000e+00> : vector<8x8xf32>
    %365 = tpu.matmul %363, %364, %cst_239 {dimension_numbers = #tpu.dot_dimension_numbers<[1], [1], [0], [0], [0, 0, 1, 0], [], []>} : vector<8x8xbf16>, vector<8x8xbf16>, vector<8x8xf32> -> vector<8x8xf32>
    %cst_240 = arith.constant -1.000000e+30 : f32
    %366 = vector.broadcast %cst_240 : f32 to vector<8x8xf32>
    %367 = arith.select %27, %365, %366 : vector<8x8xi1>, vector<8x8xf32>
    %cst_241 = arith.constant dense<0xFF800000> : vector<8xf32>
    %368 = vector.multi_reduction <maximumf>, %367, %cst_241 [1] : vector<8x8xf32> to vector<8xf32>
    %369 = vector.shape_cast %368 : vector<8xf32> to vector<8x1xf32>
    %370 = vector.broadcast %369 : vector<8x1xf32> to vector<8x8xf32>
    %371 = arith.subf %367, %370 : vector<8x8xf32>
    %372 = math.exp %371 : vector<8x8xf32>
    %cst_242 = arith.constant dense<0.000000e+00> : vector<8xf32>
    %373 = vector.multi_reduction <add>, %372, %cst_242 [1] : vector<8x8xf32> to vector<8xf32>
    %374 = vector.shape_cast %373 : vector<8xf32> to vector<8x1xf32>
    %375 = tpu.reciprocal %374 {approx = true} : vector<8x1xf32> -> vector<8x1xf32>
    %376 = vector.broadcast %375 : vector<8x1xf32> to vector<8x8xf32>
    %377 = arith.mulf %372, %376 : vector<8x8xf32>
    %378 = arith.truncf %377 : vector<8x8xf32> to vector<8x8xbf16>
    %379 = arith.truncf %362 : vector<8x8xf32> to vector<8x8xbf16>
    %cst_243 = arith.constant dense<0.000000e+00> : vector<8x8xf32>
    %380 = tpu.matmul %378, %379, %cst_243 {dimension_numbers = #tpu.dot_dimension_numbers<[1], [0], [0], [1], [0, 0, 1, 1], [], []>} : vector<8x8xbf16>, vector<8x8xbf16>, vector<8x8xf32> -> vector<8x8xf32>
    %381 = arith.truncf %380 : vector<8x8xf32> to vector<8x8xbf16>
    %c3_244 = arith.constant 3 : index
    %c0_245 = arith.constant 0 : index
    %c0_246 = arith.constant 0 : index
    %382 = vector.load %arg9[%c3_244, %c0_245, %c0_246] : memref<4x8x32xbf16, #tpu.memory_space<vmem>>, vector<1x8x32xbf16>
    %383 = vector.shape_cast %382 : vector<1x8x32xbf16> to vector<8x32xbf16>
    %cst_247 = arith.constant dense<0.000000e+00> : vector<8x32xf32>
    %384 = tpu.matmul %381, %383, %cst_247 {dimension_numbers = #tpu.dot_dimension_numbers<[1], [0], [0], [1], [0, 0, 1, 1], [], []>} : vector<8x8xbf16>, vector<8x32xbf16>, vector<8x32xf32> -> vector<8x32xf32>
    %385 = arith.addf %341, %384 : vector<8x32xf32>
    %386 = tpu.concatenate %206, %385 in 0 : vector<8x32xf32>, vector<8x32xf32> -> vector<16x32xf32>
    %c0_248 = arith.constant 0 : index
    %c0_249 = arith.constant 0 : index
    %387 = vector.load %arg10[%c0_248, %c0_249] : memref<1x32xf32, #tpu.memory_space<vmem>>, vector<1x32xf32>
    %388 = vector.broadcast %387 : vector<1x32xf32> to vector<16x32xf32>
    %389 = arith.addf %386, %388 : vector<16x32xf32>
    %390 = arith.addf %0, %389 : vector<16x32xf32>
    %c0_250 = arith.constant 0 : index
    %c0_251 = arith.constant 0 : index
    %391 = vector.load %arg11[%c0_250, %c0_251] : memref<1x32xf32, #tpu.memory_space<vmem>>, vector<1x32xf32>
    %c0_252 = arith.constant 0 : index
    %c0_253 = arith.constant 0 : index
    %392 = vector.load %arg12[%c0_252, %c0_253] : memref<1x32xf32, #tpu.memory_space<vmem>>, vector<1x32xf32>
    %cst_254 = arith.constant dense<0.000000e+00> : vector<16xf32>
    %393 = vector.multi_reduction <add>, %390, %cst_254 [1] : vector<16x32xf32> to vector<16xf32>
    %394 = vector.shape_cast %393 : vector<16xf32> to vector<16x1xf32>
    %cst_255 = arith.constant 3.200000e+01 : f32
    %395 = vector.broadcast %cst_255 : f32 to vector<16x1xf32>
    %396 = arith.divf %394, %395 : vector<16x1xf32>
    %397 = vector.broadcast %396 : vector<16x1xf32> to vector<16x32xf32>
    %398 = arith.subf %390, %397 : vector<16x32xf32>
    %399 = arith.mulf %398, %398 : vector<16x32xf32>
    %cst_256 = arith.constant dense<0.000000e+00> : vector<16xf32>
    %400 = vector.multi_reduction <add>, %399, %cst_256 [1] : vector<16x32xf32> to vector<16xf32>
    %401 = vector.shape_cast %400 : vector<16xf32> to vector<16x1xf32>
    %cst_257 = arith.constant 3.200000e+01 : f32
    %402 = vector.broadcast %cst_257 : f32 to vector<16x1xf32>
    %403 = arith.divf %401, %402 : vector<16x1xf32>
    %404 = vector.broadcast %396 : vector<16x1xf32> to vector<16x32xf32>
    %405 = arith.subf %390, %404 : vector<16x32xf32>
    %cst_258 = arith.constant 9.99999974E-6 : f32
    %406 = vector.broadcast %cst_258 : f32 to vector<16x1xf32>
    %407 = arith.addf %403, %406 : vector<16x1xf32>
    %408 = math.rsqrt %407 : vector<16x1xf32>
    %409 = vector.broadcast %408 : vector<16x1xf32> to vector<16x32xf32>
    %410 = arith.mulf %405, %409 : vector<16x32xf32>
    %411 = vector.broadcast %391 : vector<1x32xf32> to vector<16x32xf32>
    %412 = arith.mulf %410, %411 : vector<16x32xf32>
    %413 = vector.broadcast %392 : vector<1x32xf32> to vector<16x32xf32>
    %414 = arith.addf %412, %413 : vector<16x32xf32>
    %415 = arith.truncf %414 : vector<16x32xf32> to vector<16x32xbf16>
    %c0_259 = arith.constant 0 : index
    %c0_260 = arith.constant 0 : index
    %416 = vector.load %arg13[%c0_259, %c0_260] : memref<32x128xbf16, #tpu.memory_space<vmem>>, vector<32x128xbf16>
    %cst_261 = arith.constant dense<0.000000e+00> : vector<16x128xf32>
    %417 = tpu.matmul %415, %416, %cst_261 {dimension_numbers = #tpu.dot_dimension_numbers<[1], [0], [0], [1], [0, 0, 1, 1], [], []>} : vector<16x32xbf16>, vector<32x128xbf16>, vector<16x128xf32> -> vector<16x128xf32>
    %c0_262 = arith.constant 0 : index
    %c0_263 = arith.constant 0 : index
    %418 = vector.load %arg14[%c0_262, %c0_263] : memref<1x128xf32, #tpu.memory_space<vmem>>, vector<1x128xf32>
    %419 = vector.broadcast %418 : vector<1x128xf32> to vector<16x128xf32>
    %420 = arith.addf %417, %419 : vector<16x128xf32>
    %cst_264 = arith.constant 5.000000e-01 : f32
    %421 = vector.broadcast %cst_264 : f32 to vector<16x128xf32>
    %422 = arith.mulf %421, %420 : vector<16x128xf32>
    %cst_265 = arith.constant 4.471500e-02 : f32
    %423 = vector.broadcast %cst_265 : f32 to vector<16x128xf32>
    %424 = arith.mulf %423, %420 : vector<16x128xf32>
    %425 = arith.mulf %424, %420 : vector<16x128xf32>
    %426 = arith.mulf %425, %420 : vector<16x128xf32>
    %427 = arith.addf %420, %426 : vector<16x128xf32>
    %cst_266 = arith.constant 0.797884583 : f32
    %428 = vector.broadcast %cst_266 : f32 to vector<16x128xf32>
    %429 = arith.mulf %428, %427 : vector<16x128xf32>
    %430 = math.tanh %429 : vector<16x128xf32>
    %cst_267 = arith.constant 1.000000e+00 : f32
    %431 = vector.broadcast %cst_267 : f32 to vector<16x128xf32>
    %432 = arith.addf %431, %430 : vector<16x128xf32>
    %433 = arith.mulf %422, %432 : vector<16x128xf32>
    %434 = arith.truncf %433 : vector<16x128xf32> to vector<16x128xbf16>
    %c0_268 = arith.constant 0 : index
    %c0_269 = arith.constant 0 : index
    %435 = vector.load %arg15[%c0_268, %c0_269] : memref<128x32xbf16, #tpu.memory_space<vmem>>, vector<128x32xbf16>
    %cst_270 = arith.constant dense<0.000000e+00> : vector<16x32xf32>
    %436 = tpu.matmul %434, %435, %cst_270 {dimension_numbers = #tpu.dot_dimension_numbers<[1], [0], [0], [1], [0, 0, 1, 1], [], []>} : vector<16x128xbf16>, vector<128x32xbf16>, vector<16x32xf32> -> vector<16x32xf32>
    %c0_271 = arith.constant 0 : index
    %c0_272 = arith.constant 0 : index
    %437 = vector.load %arg16[%c0_271, %c0_272] : memref<1x32xf32, #tpu.memory_space<vmem>>, vector<1x32xf32>
    %438 = vector.broadcast %437 : vector<1x32xf32> to vector<16x32xf32>
    %439 = arith.addf %436, %438 : vector<16x32xf32>
    %440 = arith.addf %390, %439 : vector<16x32xf32>
    %c0_273 = arith.constant 0 : index
    %c0_274 = arith.constant 0 : index
    %441 = vector.load %arg17[%c0_273, %c0_274] : memref<16x32xf32, #tpu.memory_space<vmem>>, vector<16x32xf32>
    tpu.vector_store %arg17[%c0_273, %c0_274], %440 {strides = array<i32>} : memref<16x32xf32, #tpu.memory_space<vmem>>, vector<16x32xf32>,
    return
  }
}

</mosaic_0001>

<bundles_post_ra>
// kernel: gpt2_block.1
= control target key start
LH: loop header
LB: loop body
LE: loop exit
PB: predicated region body
PF: predicated region fallthrough
CT: control target
= control target key end

     0   :  { %s4449_s0 = inlined_call_operand.vmem [shape: f32[16,32], index: 0, kind: input, shape index: {}]   ;;  %s4450_s1 = inlined_call_operand.vmem [shape: f32[1,32], index: 1, kind: input, shape index: {}]   ;;  %s4451_s2 = inlined_call_operand.vmem [shape: f32[1,32], index: 2, kind: input, shape index: {}]   ;;  %s4452_s3 = inlined_call_operand.vmem [shape: bf16[4,32,8], index: 3, kind: input, shape index: {}]   ;;  %s4453_s4 = inlined_call_operand.vmem [shape: f32[4,1,8], index: 4, kind: input, shape index: {}]   ;;  %s4454_s5 = inlined_call_operand.vmem [shape: bf16[4,32,8], index: 5, kind: input, shape index: {}]   ;;  %s4455_s6 = inlined_call_operand.vmem [shape: f32[4,1,8], index: 6, kind: input, shape index: {}]   ;;  %s4456_s7 = inlined_call_operand.vmem [shape: bf16[4,32,8], index: 7, kind: input, shape index: {}]   ;;  %s4457_s8 = inlined_call_operand.vmem [shape: f32[4,1,8], index: 8, kind: input, shape index: {}]   ;;  %s4458_s9 = inlined_call_operand.vmem [shape: bf16[4,8,32], index: 9, kind: input, shape index: {}]   ;;  %s4459_s10 = inlined_call_operand.vmem [shape: f32[1,32], index: 10, kind: input, shape index: {}]   ;;  %s4460_s11 = inlined_call_operand.vmem [shape: f32[1,32], index: 11, kind: input, shape index: {}]   ;;  %s4461_s12 = inlined_call_operand.vmem [shape: f32[1,32], index: 12, kind: input, shape index: {}]   ;;  %s4462_s13 = inlined_call_operand.vmem [shape: bf16[32,128], index: 13, kind: input, shape index: {}]   ;;  %s4463_s14 = inlined_call_operand.vmem [shape: f32[1,128], index: 14, kind: input, shape index: {}]   ;;  %s4464_s15 = inlined_call_operand.vmem [shape: bf16[128,32], index: 15, kind: input, shape index: {}]   ;;  %s4465_s16 = inlined_call_operand.vmem [shape: f32[1,32], index: 16, kind: input, shape index: {}]   ;;  %s4466_s17 = inlined_call_operand.hbm [shape: f32[16,32], index: 17, kind: output, shape index: {}]  }
   0x1   :  { %4468 = sst [smem:[#allocation5_spill]] %s4449_s0 }
   0x2   :  { %4469 = sst [smem:[#allocation6_spill]] %s4450_s1 }
   0x3   :  { %s4470_s26 = sld [smem:[#allocation5_spill]]  ;;  %vm62_vm0 = vcmask 261120  }
   0x9   :  { %v58_v0 = vld [vmem:[%s4470_s26] sm:$0xff] }
   0xa   :  { %v63_v1 = vsel %vm62_vm0, %v58_v0, 0.0 }
   0xb   :  { %64 = vadd.xlane.f32.xlu0 %v63_v1 }
   0xc   :  { %22 = vsyncpa [#allocation3], 0  ;;  %v3745_v7 = vld [vmem:[%s4452_s3] sm:$0xff]   ;;  %v3642_v8 = vmov 0.0   ;;  %v3754_v9 = vld [vmem:[%s4452_s3 + $0x8] sm:$0xff]   ;;  %vm3643_vm1 = vmmov 0   ;;  %v106_v51 = vlaneseq }
   0xd   :  { %3170 = vmatprep.subr.bf16.mxu0 %v3642_v8  ;;  %3194 = vmatprep.subr.bf16.mxu1 %v3642_v8  ;;  %s4471_s19 = sld [smem:[#allocation6_spill]]  ;;  %v3770_v16 = vld [vmem:[%s4451_s2] ss:$0 sm:$0xff]  ;;  %v3787_v21 = vld [vmem:[%s4454_s5 + $0x8] sm:$0xff]   ;;  %vm306_vm2 = vcmask 64512   ;;  %vm370_vm3 = vcmask 1043456  }
   0xe   :  { %3171 = vmatpush3.bf16.msra.mxu0 %v3745_v7  ;;  %3174 = vmatprep.mubr.msk.bf16.mxu0 %vm3643_vm1, %v3642_v8  ;;  %v3777_v19 = vld [vmem:[%s4454_s5] sm:$0xff]   ;;  %v3805_v23 = vld [vmem:[%s4456_s7 + $0x8] sm:$0xff]   ;;  %v3839_v43 = vld [vmem:[%s4452_s3 + $0x10] sm:$0xff]   ;;  %v107_v52 = vshrl.u32 %v106_v51, 7  ;;  %v109_v53 = vand.u32 127, %v106_v51  ;;  %s3644_s20 = smov [#allocation2]  }
   0xf   :  { %3172 = vmatprep.subr.bf16.mxu0 %v3642_v8  ;;  %3196 = vmatprep.mubr.msk.bf16.mxu1 %vm3643_vm1, %v3642_v8  ;;  %v3796_v22 = vld [vmem:[%s4456_s7] sm:$0xff]   ;;  %v3847_v48 = vld [vmem:[%s4452_s3 + $0x18] sm:$0xff]   ;;  %v3857_v49 = vld [vmem:[%s4456_s7 + $0x10] sm:$0xff]  }
  0x10   :  { %v3819_v28 = vld [vmem:[%s4455_s6] ss:$0 sm:$0xff]  ;;  %v3866_v50 = vld [vmem:[%s4456_s7 + $0x18] sm:$0xff]   ;;  %vm3877_vm4 = vcmp.ge.s32.totalorder %v107_v52, %v109_v53  ;;  %v3887_v1 = vld [vmem:[%s4457_s8 + $0x1] ss:$0 sm:$0xff] }
  0x11   :  { %v3825_v35 = vld [vmem:[%s4453_s4] ss:$0 sm:$0xff] }
  0x12   :  { %3173 = vmatpush3.bf16.msra.mxu0 %v3754_v9  ;;  %v3831_v37 = vld [vmem:[%s4457_s8] ss:$0 sm:$0xff] }
  0x13   :  { %3178 = vmatprep.subr.bf16.mxu0 %v3642_v8  ;;  %v3765_v14 = vld [vmem:[%s4471_s19] ss:$0 sm:$0xff] }
  0x98   :  { %v65_v2 = vpop.xlane.xlu0 %64 }
  0x99   :  { %v70_v3 = vmul.f32 0.03125, %v65_v2 }
  0x9b   :  { %v72_v4 = vsub.f32 %v58_v0, %v70_v3 }
  0x9d   :  { %v74_v5 = vmul.f32 %v72_v4, %v72_v4 }
  0x9f   :  { %v76_v6 = vsel %vm62_vm0, %v74_v5, 0.0 }
  0xa0   :  { %77 = vadd.xlane.f32.xlu0 %v76_v6 }
 0x12d   :  { %v78_v10 = vpop.xlane.xlu0 %77 }
 0x12e   :  { %v82_v11 = vmul.f32 0.03125, %v78_v10 }
 0x130   :  { %v84_v12 = vadd.f32 1e-05, %v82_v11 }
 0x132   :  { %3573 = vrsqrt.f32 %v84_v12 }
 0x13c   :  { %v3574_v13 = vpop.eup %3573 }
 0x13d   :  { %v88_v15 = vmul.f32 %v3574_v13, %v72_v4 }
 0x13f   :  { %v96_v17 = vmul.f32 %v3765_v14, %v88_v15 }
 0x141   :  { %v104_v18 = vadd.f32 %v3770_v16, %v96_v17 }
 0x143   :  { %v3779_v20 = vpack.c.bf16 %v104_v18, %v104_v18 }
 0x145   :  { %3175 = vmatmul.mubr.msk.bf16.vlgmr.msra.gmra.mrb[0].mxu0 %vm62_vm0, %v3779_v20 }
 0x146   :  { %3179 = vmatpush3.bf16.msra.mxu0 %v3777_v19  ;;  %3182 = vmatprep.mubr.msk.bf16.mxu0 %vm3643_vm1, %v3642_v8 }
 0x147   :  { %3180 = vmatprep.subr.bf16.mxu0 %v3642_v8 }
 0x14a   :  { %3181 = vmatpush3.bf16.msra.mxu0 %v3787_v21 }
 0x14b   :  { %3186 = vmatprep.subr.bf16.mxu0 %v3642_v8 }
 0x14d   :  { %3183 = vmatmul.mubr.msk.bf16.vlgmr.msra.gmra.mrb[4].mxu0 %vm62_vm0, %v3779_v20 }
 0x14e   :  { %3187 = vmatpush3.bf16.msra.mxu0 %v3796_v22  ;;  %3190 = vmatprep.mubr.msk.bf16.mxu0 %vm3643_vm1, %v3642_v8 }
 0x14f   :  { %3188 = vmatprep.subr.bf16.mxu0 %v3642_v8 }
 0x152   :  { %3189 = vmatpush3.bf16.msra.mxu0 %v3805_v23 }
 0x153   :  { %3200 = vmatprep.subr.bf16.mxu0 %v3642_v8 }
 0x155   :  { %3191 = vmatmul.mubr.msk.bf16.vlgmr.msra.gmra.mrb[8].mxu0 %vm62_vm0, %v3779_v20 }
 0x156   :  { %3202 = vmatprep.mubr.msk.bf16.mxu0 %vm3643_vm1, %v3642_v8 }
 0x218   :  { %v172_v24 = vpop.f32.mrb[0].mxu0 }
 0x219   :  { %v3176_v25 = vpop.f32.mrb[1].mxu0  ;;  %v173_v38 = vadd.f32 %v3825_v35, %v172_v24 }
 0x21a   :  { %v175_v26 = vpop.f32.mrb[2].mxu0 }
 0x21b   :  { %v3177_v27 = vpop.f32.mrb[3].mxu0  ;;  %v304_v44 = vpack.c.bf16 %v173_v38, %v173_v38 }
 0x21c   :  { %v3896_v27 = vld [vmem:[%s4454_s5 + $0x10] sm:$0xff]  }
 0x220   :  { %v235_v29 = vpop.f32.mrb[4].mxu0 }
 0x221   :  { %v236_v30 = vadd.f32 %v3819_v28, %v235_v29  ;;  %v3184_v31 = vpop.f32.mrb[5].mxu0 }
 0x222   :  { %v238_v32 = vpop.f32.mrb[6].mxu0 }
 0x223   :  { %v305_v33 = vpack.c.bf16 %v236_v30, %v236_v30  ;;  %v3185_v34 = vpop.f32.mrb[7].mxu0  ;;  %v3903_v30 = vld [vmem:[%s4454_s5 + $0x18] sm:$0xff]  }
 0x225   :  { %v311_v36 = vsel %vm306_vm2, %v305_v33, 0 }
 0x226   :  { %3195 = vmatpush3.bf16.xpose.msra.mxu1 %v311_v36  ;;  %v3917_v36 = vld [vmem:[%s4455_s6 + $0x1] ss:$0 sm:$0xff] }
 0x227   :  { %3206 = vmatprep.subr.bf16.mxu1 %v3642_v8 }
 0x228   :  { %v298_v39 = vpop.f32.mrb[8].mxu0 }
 0x229   :  { %v299_v40 = vadd.f32 %v3831_v37, %v298_v39  ;;  %v3192_v41 = vpop.f32.mrb[9].mxu0 }
 0x22a   :  { %v301_v42 = vpop.f32.mrb[10].mxu0 }
 0x22b   :  { %v366_v45 = vpack.c.bf16 %v299_v40, %v299_v40  ;;  %v3193_v46 = vpop.f32.mrb[11].mxu0 }
 0x22d   :  { %v372_v47 = vsel %vm370_vm3, %v366_v45, 0  ;;  %3197 = vmatmul.mubr.msk.bf16.vlgmr.msra.gmra.mrb[0].mxu1 %vm306_vm2, %v304_v44  ;;  %v3923_v45 = vld [vmem:[%s4453_s4 + $0x1] ss:$0 sm:$0xff] }
 0x22e   :  { %3201 = vmatpush3.bf16.msra.mxu0 %v372_v47  ;;  %3207 = vmatpush3.bf16.msra.mxu1 %v3839_v43 }
 0x22f   :  { %3208 = vmatprep.subr.bf16.mxu1 %v3642_v8  ;;  %3210 = vmatprep.mubr.msk.bf16.mxu1 %vm3643_vm1, %v3642_v8 }
 0x230   :  { %3214 = vmatprep.subr.bf16.mxu0 %v3642_v8 }
 0x232   :  { %3209 = vmatpush3.bf16.msra.mxu1 %v3847_v48 }
 0x233   :  { %3222 = vmatprep.subr.bf16.mxu1 %v3642_v8 }
 0x235   :  { %3211 = vmatmul.mubr.msk.bf16.vlgmr.msra.gmra.mrb[4].mxu1 %vm62_vm0, %v3779_v20 }
 0x236   :  { %3223 = vmatpush3.bf16.msra.mxu1 %v3857_v49  ;;  %3226 = vmatprep.mubr.msk.bf16.mxu1 %vm3643_vm1, %v3642_v8 }
 0x237   :  { %3224 = vmatprep.subr.bf16.mxu1 %v3642_v8 }
 0x23a   :  { %3225 = vmatpush3.bf16.msra.mxu1 %v3866_v50 }
 0x23b   :  { %3236 = vmatprep.subr.bf16.mxu1 %v3642_v8 }
 0x23d   :  { %3227 = vmatmul.mubr.msk.bf16.vlgmr.msra.gmra.mrb[8].mxu1 %vm62_vm0, %v3779_v20 }
 0x23e   :  { %3238 = vmatprep.mubr.msk.bf16.mxu1 %vm3643_vm1, %v3642_v8 }
 0x300   :  { %v347_v55 = vpop.f32.mrb[0].mxu1 }
 0x301   :  { %v353_v56 = vsel %vm3877_vm4, %v347_v55, -1e+30  ;;  %v3198_v57 = vpop.f32.mrb[1].mxu1 }
 0x302   :  { %v350_v58 = vpop.f32.mrb[2].mxu1  ;;  %v354_v59 = vsel %vm306_vm2, %v353_v56, -inf }
 0x303   :  { %355 = vmax.xlane.f32.xlu1 %v354_v59  ;;  %v3199_v60 = vpop.f32.mrb[3].mxu1 }
 0x308   :  { %v475_v61 = vpop.f32.mrb[4].mxu1 }
 0x309   :  { %v3212_v62 = vpop.f32.mrb[5].mxu1  ;;  %v476_v47 = vadd.f32 %v3923_v45, %v475_v61 }
 0x30a   :  { %v478_v63 = vpop.f32.mrb[6].mxu1 }
 0x30b   :  { %v3213_v0 = vpop.f32.mrb[7].mxu1  ;;  %v611_v51 = vpack.c.bf16 %v476_v47, %v476_v47 }
 0x30c   :  { %v2933_v0 = vld [vmem:[%s4458_s9 + $0x4] sm:$0xf] }
 0x310   :  { %v605_v2 = vpop.f32.mrb[8].mxu1 }
 0x311   :  { %v606_v3 = vadd.f32 %v3887_v1, %v605_v2  ;;  %v3228_v4 = vpop.f32.mrb[9].mxu1  ;;  %v3939_v2 = vsel %vm370_vm3, %v2933_v0, 0 }
 0x312   :  { %v608_v5 = vpop.f32.mrb[10].mxu1 }
 0x313   :  { %v672_v6 = vpack.c.bf16 %v606_v3, %v606_v3  ;;  %v3229_v10 = vpop.f32.mrb[11].mxu1  ;;  %v415_v5 = vld [vmem:[%s4458_s9] sm:$0xf] }
 0x315   :  { %v677_v11 = vsel %vm370_vm3, %v672_v6, 0 }
 0x316   :  { %3237 = vmatpush3.bf16.msra.mxu1 %v677_v11  ;;  %v3947_v11 = vsel %vm370_vm3, %v415_v5, 0  ;;  %v4034_v5 = vld [vmem:[%s4457_s8 + $0x2] ss:$0 sm:$0xff] }
 0x317   :  { %3248 = vmatprep.subr.bf16.mxu1 %v3642_v8 }
 0x390   :  { %v356_v12 = vpop.xlane.xlu1 %355 }
 0x391   :  { %v357_v13 = vsub.f32 %v353_v56, %v356_v12  ;;  %v3957_v12 = vld [vmem:[%s4454_s5 + $0x20] sm:$0xff]  }
 0x393   :  { %v358_v15 = vmul.f32 1.442695, %v357_v13 }
 0x395   :  { %3575 = vpow2.f32 %v358_v15  ;;  %v3964_v15 = vld [vmem:[%s4454_s5 + $0x28] sm:$0xff]  }
 0x39f   :  { %v3576_v17 = vpop.eup %3575 }
 0x3a0   :  { %v360_v18 = vsel %vm306_vm2, %v3576_v17, 0.0 }
 0x3a1   :  { %361 = vadd.xlane.f32.xlu1 %v360_v18  ;;  %v3978_v18 = vld [vmem:[%s4452_s3 + $0x20] sm:$0xff]  }
 0x42e   :  { %v362_v24 = vpop.xlane.xlu1 %361 }
 0x42f   :  { %3577 = vrcp.f32 %v362_v24 }
 0x439   :  { %v3578_v25 = vpop.eup %3577 }
 0x43a   :  { %v364_v26 = vmul.f32 %v3578_v25, %v3576_v17 }
 0x43c   :  { %v365_v29 = vpack.c.bf16 %v364_v26, %v364_v26 }
 0x43e   :  { %3203 = vmatmul.mubr.msk.bf16.vlgmr.msra.gmra.mrb[12].mxu0 %vm306_vm2, %v365_v29 }
 0x43f   :  { %3215 = vmatpush3.bf16.msra.mxu0 %v3896_v27  ;;  %3218 = vmatprep.mubr.msk.bf16.mxu0 %vm3643_vm1, %v3642_v8 }
 0x440   :  { %3216 = vmatprep.subr.bf16.mxu0 %v3642_v8 }
 0x443   :  { %3217 = vmatpush3.bf16.msra.mxu0 %v3903_v30 }
 0x444   :  { %3230 = vmatprep.subr.bf16.mxu0 %v3642_v8 }
 0x446   :  { %3219 = vmatmul.mubr.msk.bf16.vlgmr.msra.gmra.mrb[16].mxu0 %vm62_vm0, %v3779_v20 }
 0x447   :  { %3232 = vmatprep.mubr.msk.bf16.mxu0 %vm3643_vm1, %v3642_v8 }
 0x511   :  { %v408_v31 = vpop.f32.mrb[12].mxu0 }
 0x512   :  { %v3204_v32 = vpop.f32.mrb[13].mxu0  ;;  %v414_v13 = vpack.c.bf16 %v408_v31, %v408_v31  ;;  %v3985_v31 = vld [vmem:[%s4452_s3 + $0x28] sm:$0xff]  }
 0x513   :  { %v411_v33 = vpop.f32.mrb[14].mxu0 }
 0x514   :  { %v3205_v34 = vpop.f32.mrb[15].mxu0  ;;  %v3994_v33 = vld [vmem:[%s4456_s7 + $0x20] sm:$0xff]  }
 0x519   :  { %v540_v38 = vpop.f32.mrb[16].mxu0 }
 0x51a   :  { %v541_v39 = vadd.f32 %v3917_v36, %v540_v38  ;;  %v3220_v40 = vpop.f32.mrb[17].mxu0 }
 0x51b   :  { %v543_v41 = vpop.f32.mrb[18].mxu0  ;;  %v4003_v40 = vld [vmem:[%s4456_s7 + $0x28] sm:$0xff]  }
 0x51c   :  { %v612_v42 = vpack.c.bf16 %v541_v39, %v541_v39  ;;  %v3221_v44 = vpop.f32.mrb[19].mxu0  ;;  %v4011_v41 = vld [vmem:[%s4455_s6 + $0x2] ss:$0 sm:$0xff] }
 0x51e   :  { %v617_v46 = vsel %vm306_vm2, %v612_v42, 0 }
 0x51f   :  { %3231 = vmatpush3.bf16.xpose.msra.mxu0 %v617_v46 }
 0x520   :  { %3242 = vmatprep.subr.bf16.mxu0 %v3642_v8 }
 0x526   :  { %3233 = vmatmul.mubr.msk.bf16.vlgmr.msra.gmra.mrb[20].mxu0 %vm306_vm2, %v611_v51 }
 0x527   :  { %3244 = vmatprep.mubr.msk.bf16.mxu0 %vm3643_vm1, %v3642_v8  ;;  %3243 = vmatpush3.bf16.msra.mxu0 %v3939_v2 }
 0x528   :  { %3254 = vmatprep.subr.bf16.mxu0 %v3642_v8 }
 0x5f9   :  { %v653_v52 = vpop.f32.mrb[20].mxu0 }
 0x5fa   :  { %v659_v53 = vsel %vm3877_vm4, %v653_v52, -1e+30  ;;  %v3234_v55 = vpop.f32.mrb[21].mxu0 }
 0x5fb   :  { %v656_v56 = vpop.f32.mrb[22].mxu0  ;;  %v660_v57 = vsel %vm306_vm2, %v659_v53, -inf }
 0x5fc   :  { %661 = vmax.xlane.f32.xlu0 %v660_v57  ;;  %v3235_v58 = vpop.f32.mrb[23].mxu0 }
 0x689   :  { %v662_v59 = vpop.xlane.xlu0 %661 }
 0x68a   :  { %v663_v60 = vsub.f32 %v659_v53, %v662_v59 }
 0x68c   :  { %v664_v61 = vmul.f32 1.442695, %v663_v60  ;;  %v4027_v60 = vld [vmem:[%s4453_s4 + $0x2] ss:$0 sm:$0xff] }
 0x68e   :  { %3579 = vpow2.f32 %v664_v61 }
 0x698   :  { %v3580_v62 = vpop.eup %3579 }
 0x699   :  { %v666_v63 = vsel %vm306_vm2, %v3580_v62, 0.0 }
 0x69a   :  { %667 = vadd.xlane.f32.xlu1 %v666_v63 }
 0x727   :  { %v668_v3 = vpop.xlane.xlu1 %667 }
 0x728   :  { %3581 = vrcp.f32 %v668_v3 }
 0x732   :  { %v3582_v4 = vpop.eup %3581 }
 0x733   :  { %v670_v6 = vmul.f32 %v3582_v4, %v3580_v62 }
 0x735   :  { %v671_v10 = vpack.c.bf16 %v670_v6, %v670_v6 }
 0x737   :  { %3239 = vmatmul.mubr.msk.bf16.vlgmr.msra.gmra.mrb[12].mxu1 %vm306_vm2, %v671_v10 }
 0x738   :  { %3249 = vmatpush3.bf16.msra.mxu1 %v3947_v11  ;;  %3250 = vmatprep.mubr.msk.bf16.mxu1 %vm3643_vm1, %v3642_v8 }
 0x739   :  { %3262 = vmatprep.subr.bf16.mxu1 %v3642_v8 }
 0x73f   :  { %3251 = vmatmul.mubr.msk.bf16.vlgmr.msra.gmra.mrb[16].mxu1 %vm306_vm2, %v414_v13 }
 0x740   :  { %3263 = vmatpush3.bf16.msra.mxu1 %v3957_v12  ;;  %3266 = vmatprep.mubr.msk.bf16.mxu1 %vm3643_vm1, %v3642_v8 }
 0x741   :  { %3264 = vmatprep.subr.bf16.mxu1 %v3642_v8 }
 0x744   :  { %3265 = vmatpush3.bf16.msra.mxu1 %v3964_v15 }
 0x745   :  { %3278 = vmatprep.subr.bf16.mxu1 %v3642_v8 }
 0x747   :  { %3267 = vmatmul.mubr.msk.bf16.vlgmr.msra.gmra.mrb[20].mxu1 %vm62_vm0, %v3779_v20 }
 0x748   :  { %3280 = vmatprep.mubr.msk.bf16.mxu1 %vm3643_vm1, %v3642_v8 }
 0x80a   :  { %v713_v17 = vpop.f32.mrb[12].mxu1 }
 0x80b   :  { %v719_v24 = vpack.c.bf16 %v713_v17, %v713_v17  ;;  %v3240_v25 = vpop.f32.mrb[13].mxu1 }
 0x80c   :  { %v716_v26 = vpop.f32.mrb[14].mxu1 }
 0x80d   :  { %v3241_v29 = vpop.f32.mrb[15].mxu1  ;;  %3245 = vmatmul.mubr.msk.bf16.vlgmr.msra.gmra.mrb[24].mxu0 %vm306_vm2, %v719_v24 }
 0x80e   :  { %3255 = vmatpush3.bf16.msra.mxu0 %v3978_v18  ;;  %3258 = vmatprep.mubr.msk.bf16.mxu0 %vm3643_vm1, %v3642_v8 }
 0x80f   :  { %3256 = vmatprep.subr.bf16.mxu0 %v3642_v8 }
 0x812   :  { %v808_v32 = vpop.f32.mrb[16].mxu1  ;;  %3257 = vmatpush3.bf16.msra.mxu0 %v3985_v31 }
 0x813   :  { %v3252_v34 = vpop.f32.mrb[17].mxu1  ;;  %3270 = vmatprep.subr.bf16.mxu0 %v3642_v8 }
 0x814   :  { %v811_v38 = vpop.f32.mrb[18].mxu1 }
 0x815   :  { %v3253_v39 = vpop.f32.mrb[19].mxu1  ;;  %3259 = vmatmul.mubr.msk.bf16.vlgmr.msra.gmra.mrb[28].mxu0 %vm62_vm0, %v3779_v20 }
 0x816   :  { %3271 = vmatpush3.bf16.msra.mxu0 %v3994_v33  ;;  %3274 = vmatprep.mubr.msk.bf16.mxu0 %vm3643_vm1, %v3642_v8 }
 0x817   :  { %3272 = vmatprep.subr.bf16.mxu0 %v3642_v8 }
 0x81a   :  { %v938_v42 = vpop.f32.mrb[20].mxu1  ;;  %3273 = vmatpush3.bf16.msra.mxu0 %v4003_v40 }
 0x81b   :  { %v939_v44 = vadd.f32 %v4011_v41, %v938_v42  ;;  %v3268_v46 = vpop.f32.mrb[21].mxu1  ;;  %3284 = vmatprep.subr.bf16.mxu0 %v3642_v8 }
 0x81c   :  { %v941_v47 = vpop.f32.mrb[22].mxu1 }
 0x81d   :  { %v1010_v51 = vpack.c.bf16 %v939_v44, %v939_v44  ;;  %v3269_v52 = vpop.f32.mrb[23].mxu1  ;;  %3275 = vmatmul.mubr.msk.bf16.vlgmr.msra.gmra.mrb[32].mxu0 %vm62_vm0, %v3779_v20 }
 0x81e   :  { %3286 = vmatprep.mubr.msk.bf16.mxu0 %vm3643_vm1, %v3642_v8 }
 0x81f   :  { %v1015_v53 = vsel %vm306_vm2, %v1010_v51, 0 }
 0x820   :  { %3279 = vmatpush3.bf16.xpose.msra.mxu1 %v1015_v53  ;;  %v2965_v53 = vld [vmem:[%s4458_s9 + $0x8] sm:$0xf] }
 0x821   :  { %3290 = vmatprep.subr.bf16.mxu1 %v3642_v8 }
 0x8e0   :  { %v762_v55 = vpop.f32.mrb[24].mxu0 }
 0x8e1   :  { %v4022_v56 = vadd.f32 %v808_v32, %v762_v55  ;;  %v3246_v57 = vpop.f32.mrb[25].mxu0  ;;  %v4049_v55 = vsel %vm370_vm3, %v2965_v53, 0 }
 0x8e2   :  { %v765_v58 = vpop.f32.mrb[26].mxu0 }
 0x8e3   :  { %v3247_v59 = vpop.f32.mrb[27].mxu0 }
 0x8e8   :  { %v873_v61 = vpop.f32.mrb[28].mxu0 }
 0x8e9   :  { %v874_v62 = vadd.f32 %v4027_v60, %v873_v61  ;;  %v3260_v63 = vpop.f32.mrb[29].mxu0  ;;  %v4056_v61 = vld [vmem:[%s4452_s3 + $0x30] sm:$0xff]  }
 0x8ea   :  { %v876_v0 = vpop.f32.mrb[30].mxu0  ;;  %v4063_v63 = vld [vmem:[%s4452_s3 + $0x38] sm:$0xff]  }
 0x8eb   :  { %v1009_v3 = vpack.c.bf16 %v874_v62, %v874_v62  ;;  %v3261_v4 = vpop.f32.mrb[31].mxu0  ;;  %v4072_v0 = vld [vmem:[%s4456_s7 + $0x30] sm:$0xff]  }
 0x8ed   :  { %3281 = vmatmul.mubr.msk.bf16.vlgmr.msra.gmra.mrb[24].mxu1 %vm306_vm2, %v1009_v3  ;;  %v4081_v3 = vld [vmem:[%s4456_s7 + $0x38] sm:$0xff]  }
 0x8ee   :  { %3292 = vmatprep.mubr.msk.bf16.mxu1 %vm3643_vm1, %v3642_v8  ;;  %3291 = vmatpush3.bf16.msra.mxu1 %v4049_v55 }
 0x8ef   :  { %3304 = vmatprep.subr.bf16.mxu1 %v3642_v8 }
 0x8f0   :  { %v1003_v6 = vpop.f32.mrb[32].mxu0 }
 0x8f1   :  { %v1004_v10 = vadd.f32 %v4034_v5, %v1003_v6  ;;  %v3276_v13 = vpop.f32.mrb[33].mxu0  ;;  %v4095_v6 = vld [vmem:[%s4454_s5 + $0x30] sm:$0xff]  }
 0x8f2   :  { %v1006_v17 = vpop.f32.mrb[34].mxu0 }
 0x8f3   :  { %v1070_v24 = vpack.c.bf16 %v1004_v10, %v1004_v10  ;;  %v3277_v25 = vpop.f32.mrb[35].mxu0 }
 0x8f4   :  { %v4102_v25 = vld [vmem:[%s4454_s5 + $0x38] sm:$0xff]  }
 0x8f5   :  { %v1075_v26 = vsel %vm370_vm3, %v1070_v24, 0 }
 0x8f6   :  { %3285 = vmatpush3.bf16.msra.mxu0 %v1075_v26 }
 0x8f7   :  { %3296 = vmatprep.subr.bf16.mxu0 %v3642_v8 }
 0x9c0   :  { %v1051_v29 = vpop.f32.mrb[24].mxu1 }
 0x9c1   :  { %v1057_v32 = vsel %vm3877_vm4, %v1051_v29, -1e+30  ;;  %v3282_v34 = vpop.f32.mrb[25].mxu1 }
 0x9c2   :  { %v1054_v38 = vpop.f32.mrb[26].mxu1  ;;  %v1058_v39 = vsel %vm306_vm2, %v1057_v32, -inf }
 0x9c3   :  { %1059 = vmax.xlane.f32.xlu0 %v1058_v39  ;;  %v3283_v42 = vpop.f32.mrb[27].mxu1  ;;  %v4116_v38 = vld [vmem:[%s4457_s8 + $0x3] ss:$0 sm:$0xff] }
 0xa50   :  { %v1060_v44 = vpop.xlane.xlu0 %1059 }
 0xa51   :  { %v1061_v46 = vsub.f32 %v1057_v32, %v1060_v44 }
 0xa53   :  { %v1062_v47 = vmul.f32 1.442695, %v1061_v46 }
 0xa55   :  { %3583 = vpow2.f32 %v1062_v47 }
 0xa5f   :  { %v3584_v51 = vpop.eup %3583 }
 0xa60   :  { %v1064_v52 = vsel %vm306_vm2, %v3584_v51, 0.0 }
 0xa61   :  { %1065 = vadd.xlane.f32.xlu1 %v1064_v52 }
 0xaee   :  { %v1066_v57 = vpop.xlane.xlu1 %1065 }
 0xaef   :  { %3585 = vrcp.f32 %v1066_v57 }
 0xaf9   :  { %v3586_v58 = vpop.eup %3585 }
 0xafa   :  { %v1068_v59 = vmul.f32 %v3586_v58, %v3584_v51 }
 0xafc   :  { %v1069_v62 = vpack.c.bf16 %v1068_v59, %v1068_v59 }
 0xafe   :  { %3287 = vmatmul.mubr.msk.bf16.vlgmr.msra.gmra.mrb[36].mxu0 %vm306_vm2, %v1069_v62  ;;  %v4127_v62 = vld [vmem:[%s4455_s6 + $0x3] ss:$0 sm:$0xff] }
 0xaff   :  { %3297 = vmatpush3.bf16.msra.mxu0 %v4056_v61  ;;  %3300 = vmatprep.mubr.msk.bf16.mxu0 %vm3643_vm1, %v3642_v8 }
 0xb00   :  { %3298 = vmatprep.subr.bf16.mxu0 %v3642_v8 }
 0xb03   :  { %3299 = vmatpush3.bf16.msra.mxu0 %v4063_v63 }
 0xb04   :  { %3312 = vmatprep.subr.bf16.mxu0 %v3642_v8 }
 0xb06   :  { %3301 = vmatmul.mubr.msk.bf16.vlgmr.msra.gmra.mrb[40].mxu0 %vm62_vm0, %v3779_v20 }
 0xb07   :  { %3313 = vmatpush3.bf16.msra.mxu0 %v4072_v0  ;;  %3316 = vmatprep.mubr.msk.bf16.mxu0 %vm3643_vm1, %v3642_v8 }
 0xb08   :  { %3314 = vmatprep.subr.bf16.mxu0 %v3642_v8 }
 0xb0b   :  { %3315 = vmatpush3.bf16.msra.mxu0 %v4081_v3 }
 0xb0c   :  { %3326 = vmatprep.subr.bf16.mxu0 %v3642_v8 }
 0xb0e   :  { %3317 = vmatmul.mubr.msk.bf16.vlgmr.msra.gmra.mrb[44].mxu0 %vm62_vm0, %v3779_v20 }
 0xb0f   :  { %3328 = vmatprep.mubr.msk.bf16.mxu0 %vm3643_vm1, %v3642_v8 }
 0xbd1   :  { %v1111_v4 = vpop.f32.mrb[36].mxu0 }
 0xbd2   :  { %v1117_v10 = vpack.c.bf16 %v1111_v4, %v1111_v4  ;;  %v3288_v13 = vpop.f32.mrb[37].mxu0 }
 0xbd3   :  { %v1114_v17 = vpop.f32.mrb[38].mxu0 }
 0xbd4   :  { %v3289_v24 = vpop.f32.mrb[39].mxu0  ;;  %3293 = vmatmul.mubr.msk.bf16.vlgmr.msra.gmra.mrb[28].mxu1 %vm306_vm2, %v1117_v10 }
 0xbd5   :  { %3305 = vmatpush3.bf16.msra.mxu1 %v4095_v6  ;;  %3308 = vmatprep.mubr.msk.bf16.mxu1 %vm3643_vm1, %v3642_v8 }
 0xbd6   :  { %3306 = vmatprep.subr.bf16.mxu1 %v3642_v8 }
 0xbd9   :  { %v1226_v26 = vpop.f32.mrb[40].mxu0  ;;  %3307 = vmatpush3.bf16.msra.mxu1 %v4102_v25 }
 0xbda   :  { %v3302_v29 = vpop.f32.mrb[41].mxu0  ;;  %3320 = vmatprep.subr.bf16.mxu1 %v3642_v8 }
 0xbdb   :  { %v1229_v32 = vpop.f32.mrb[42].mxu0 }
 0xbdc   :  { %v3303_v34 = vpop.f32.mrb[43].mxu0  ;;  %3309 = vmatmul.mubr.msk.bf16.vlgmr.msra.gmra.mrb[32].mxu1 %vm62_vm0, %v3779_v20 }
 0xbdd   :  { %3322 = vmatprep.mubr.msk.bf16.mxu1 %vm3643_vm1, %v3642_v8 }
 0xbe1   :  { %v1356_v39 = vpop.f32.mrb[44].mxu0 }
 0xbe2   :  { %v1357_v42 = vadd.f32 %v4116_v38, %v1356_v39  ;;  %v3318_v44 = vpop.f32.mrb[45].mxu0 }
 0xbe3   :  { %v1359_v46 = vpop.f32.mrb[46].mxu0 }
 0xbe4   :  { %v1423_v47 = vpack.c.bf16 %v1357_v42, %v1357_v42  ;;  %v3319_v51 = vpop.f32.mrb[47].mxu0 }
 0xbe6   :  { %v1428_v52 = vsel %vm370_vm3, %v1423_v47, 0  ;;  %v4146_v47 = vld [vmem:[%s4470_s26 + $0x8] sm:$0xff] }
 0xbe7   :  { %3327 = vmatpush3.bf16.msra.mxu0 %v1428_v52 }
 0xbe8   :  { %3338 = vmatprep.subr.bf16.mxu0 %v3642_v8 }
 0xca7   :  { %v1160_v20 = vpop.f32.mrb[28].mxu1 }
 0xca8   :  { %v4122_v53 = vadd.f32 %v1160_v20, %v4022_v56  ;;  %v3294_v57 = vpop.f32.mrb[29].mxu1  ;;  %v4133_v56 = vld [vmem:[%s4453_s4 + $0x3] ss:$0 sm:$0xff]  ;;  %v66_v20 = vsel %vm62_vm0, %v4146_v47, 0.0 }
 0xca9   :  { %v1163_v58 = vpop.f32.mrb[30].mxu1  ;;  %v1227_v34 = vadd.f32 %v4133_v56, %v1226_v26 }
 0xcaa   :  { %v3295_v59 = vpop.f32.mrb[31].mxu1 }
 0xcab   :  { %v1362_v39 = vpack.c.bf16 %v1227_v34, %v1227_v34  ;;  %v2996_v34 = vld [vmem:[%s4458_s9 + $0xc] sm:$0xf] }
 0xcaf   :  { %v1291_v4 = vpop.f32.mrb[32].mxu1 }
 0xcb0   :  { %v1292_v10 = vadd.f32 %v4127_v62, %v1291_v4  ;;  %v3310_v13 = vpop.f32.mrb[33].mxu1 }
 0xcb1   :  { %v1294_v17 = vpop.f32.mrb[34].mxu1 }
 0xcb2   :  { %v1363_v24 = vpack.c.bf16 %v1292_v10, %v1292_v10  ;;  %v3311_v29 = vpop.f32.mrb[35].mxu1 }
 0xcb4   :  { %v1368_v32 = vsel %vm306_vm2, %v1363_v24, 0 }
 0xcb5   :  { %3321 = vmatpush3.bf16.xpose.msra.mxu1 %v1368_v32 }
 0xcb6   :  { %3332 = vmatprep.subr.bf16.mxu1 %v3642_v8 }
 0xcbc   :  { %3323 = vmatmul.mubr.msk.bf16.vlgmr.msra.gmra.mrb[36].mxu1 %vm306_vm2, %v1362_v39  ;;  %v4158_v39 = vsel %vm370_vm3, %v2996_v34, 0 }
 0xcbd   :  { %3334 = vmatprep.mubr.msk.bf16.mxu1 %vm3643_vm1, %v3642_v8  ;;  %3333 = vmatpush3.bf16.msra.mxu1 %v4158_v39 }
 0xcbe   :  { %3346 = vmatprep.subr.bf16.mxu1 %v3642_v8 }
 0xd8f   :  { %v1404_v42 = vpop.f32.mrb[36].mxu1 }
 0xd90   :  { %v1410_v44 = vsel %vm3877_vm4, %v1404_v42, -1e+30  ;;  %v3324_v46 = vpop.f32.mrb[37].mxu1 }
 0xd91   :  { %v1407_v51 = vpop.f32.mrb[38].mxu1  ;;  %v1411_v26 = vsel %vm306_vm2, %v1410_v44, -inf }
 0xd92   :  { %1412 = vmax.xlane.f32.xlu0 %v1411_v26  ;;  %v3325_v52 = vpop.f32.mrb[39].mxu1 }
 0xd96   :  { %67 = vadd.xlane.f32.xlu0 %v66_v20 }
 0xe1f   :  { %v1413_v57 = vpop.xlane.xlu0 %1412 }
 0xe20   :  { %v1414_v58 = vsub.f32 %v1410_v44, %v1413_v57 }
 0xe22   :  { %v1415_v59 = vmul.f32 1.442695, %v1414_v58 }
 0xe23   :  { %v68_v4 = vpop.xlane.xlu0 %67 }
 0xe24   :  { %3587 = vpow2.f32 %v1415_v59  ;;  %v71_v10 = vmul.f32 0.03125, %v68_v4 }
 0xe26   :  { %v73_v13 = vsub.f32 %v4146_v47, %v71_v10 }
 0xe28   :  { %v75_v17 = vmul.f32 %v73_v13, %v73_v13 }
 0xe2a   :  { %v79_v32 = vsel %vm62_vm0, %v75_v17, 0.0 }
 0xe2e   :  { %v3588_v24 = vpop.eup %3587 }
 0xe2f   :  { %v1417_v29 = vsel %vm306_vm2, %v3588_v24, 0.0 }
 0xe30   :  { %1418 = vadd.xlane.f32.xlu1 %v1417_v29 }
 0xe34   :  { %80 = vadd.xlane.f32.xlu1 %v79_v32 }
 0xebd   :  { %v1419_v42 = vpop.xlane.xlu1 %1418 }
 0xebe   :  { %3589 = vrcp.f32 %v1419_v42 }
 0xec1   :  { %v81_v44 = vpop.xlane.xlu1 %80 }
 0xec2   :  { %v83_v46 = vmul.f32 0.03125, %v81_v44 }
 0xec4   :  { %v85_v51 = vadd.f32 1e-05, %v83_v46 }
 0xec6   :  { %3591 = vrsqrt.f32 %v85_v51 }
 0xec8   :  { %v3590_v26 = vpop.eup %3589 }
 0xec9   :  { %v1421_v52 = vmul.f32 %v3590_v26, %v3588_v24 }
 0xecb   :  { %v1422_v20 = vpack.c.bf16 %v1421_v52, %v1421_v52 }
 0xecd   :  { %3329 = vmatmul.mubr.msk.bf16.vlgmr.msra.gmra.mrb[48].mxu0 %vm306_vm2, %v1422_v20 }
 0xece   :  { %3339 = vmatpush3.bf16.msra.mxu0 %v3745_v7  ;;  %3342 = vmatprep.mubr.msk.bf16.mxu0 %vm3643_vm1, %v3642_v8 }
 0xecf   :  { %3340 = vmatprep.subr.bf16.mxu0 %v3642_v8 }
 0xed0   :  { %v3592_v57 = vpop.eup %3591 }
 0xed1   :  { %v89_v58 = vmul.f32 %v3592_v57, %v73_v13 }
 0xed2   :  { %3341 = vmatpush3.bf16.msra.mxu0 %v3754_v9 }
 0xed3   :  { %v97_v59 = vmul.f32 %v3765_v14, %v89_v58  ;;  %3354 = vmatprep.subr.bf16.mxu0 %v3642_v8 }
 0xed5   :  { %v105_v4 = vadd.f32 %v3770_v16, %v97_v59 }
 0xed7   :  { %v4171_v10 = vpack.c.bf16 %v105_v4, %v105_v4 }
 0xed9   :  { %3343 = vmatmul.mubr.msk.bf16.vlgmr.msra.gmra.mrb[52].mxu0 %vm62_vm0, %v4171_v10 }
 0xeda   :  { %3355 = vmatpush3.bf16.msra.mxu0 %v3796_v22  ;;  %3358 = vmatprep.mubr.msk.bf16.mxu0 %vm3643_vm1, %v3642_v8 }
 0xedb   :  { %3356 = vmatprep.subr.bf16.mxu0 %v3642_v8 }
 0xede   :  { %3357 = vmatpush3.bf16.msra.mxu0 %v3805_v23 }
 0xedf   :  { %3368 = vmatprep.subr.bf16.mxu0 %v3642_v8 }
 0xee1   :  { %3359 = vmatmul.mubr.msk.bf16.vlgmr.msra.gmra.mrb[56].mxu0 %vm62_vm0, %v4171_v10 }
 0xee2   :  { %3370 = vmatprep.mubr.msk.bf16.mxu0 %vm3643_vm1, %v3642_v8 }
 0xfa0   :  { %v1464_v7 = vpop.f32.mrb[48].mxu0 }
 0xfa1   :  { %v1470_v9 = vpack.c.bf16 %v1464_v7, %v1464_v7  ;;  %v3330_v14 = vpop.f32.mrb[49].mxu0 }
 0xfa2   :  { %v1467_v16 = vpop.f32.mrb[50].mxu0 }
 0xfa3   :  { %v3331_v22 = vpop.f32.mrb[51].mxu0  ;;  %3335 = vmatmul.mubr.msk.bf16.vlgmr.msra.gmra.mrb[40].mxu1 %vm306_vm2, %v1470_v9 }
 0xfa4   :  { %3347 = vmatpush3.bf16.msra.mxu1 %v3777_v19  ;;  %3350 = vmatprep.mubr.msk.bf16.mxu1 %vm3643_vm1, %v3642_v8 }
 0xfa5   :  { %3348 = vmatprep.subr.bf16.mxu1 %v3642_v8 }
 0xfa8   :  { %3349 = vmatpush3.bf16.msra.mxu1 %v3787_v21 }
 0xfa9   :  { %3362 = vmatprep.subr.bf16.mxu1 %v3642_v8 }
 0xfab   :  { %3351 = vmatmul.mubr.msk.bf16.vlgmr.msra.gmra.mrb[44].mxu1 %vm62_vm0, %v4171_v10 }
 0xfac   :  { %v1558_v23 = vpop.f32.mrb[52].mxu0  ;;  %3364 = vmatprep.mubr.msk.bf16.mxu1 %vm3643_vm1, %v3642_v8 }
 0xfad   :  { %v3344_v13 = vpop.f32.mrb[53].mxu0  ;;  %v1559_v14 = vadd.f32 %v3825_v35, %v1558_v23 }
 0xfae   :  { %v1561_v17 = vpop.f32.mrb[54].mxu0 }
 0xfaf   :  { %v3345_v24 = vpop.f32.mrb[55].mxu0  ;;  %v1644_v16 = vpack.c.bf16 %v1559_v14, %v1559_v14 }
 0xfb4   :  { %v1638_v19 = vpop.f32.mrb[56].mxu0 }
 0xfb5   :  { %v1639_v29 = vadd.f32 %v3831_v37, %v1638_v19  ;;  %v3360_v32 = vpop.f32.mrb[57].mxu0 }
 0xfb6   :  { %v1641_v34 = vpop.f32.mrb[58].mxu0 }
 0xfb7   :  { %v1705_v42 = vpack.c.bf16 %v1639_v29, %v1639_v29  ;;  %v3361_v44 = vpop.f32.mrb[59].mxu0 }
 0xfb9   :  { %v1710_v21 = vsel %vm370_vm3, %v1705_v42, 0 }
 0xfba   :  { %3369 = vmatpush3.bf16.msra.mxu0 %v1710_v21 }
 0xfbb   :  { %3382 = vmatprep.subr.bf16.mxu0 %v3642_v8 }
0x1076   :  { %v1513_v46 = vpop.f32.mrb[40].mxu1 }
0x1077   :  { %v4200_v51 = vadd.f32 %v1513_v46, %v4122_v53  ;;  %v3336_v26 = vpop.f32.mrb[41].mxu1 }
0x1078   :  { %v1516_v52 = vpop.f32.mrb[42].mxu1 }
0x1079   :  { %v3337_v20 = vpop.f32.mrb[43].mxu1 }
0x107e   :  { %v1598_v57 = vpop.f32.mrb[44].mxu1 }
0x107f   :  { %v1599_v58 = vadd.f32 %v3819_v28, %v1598_v57  ;;  %v3352_v37 = vpop.f32.mrb[45].mxu1 }
0x1080   :  { %v1601_v59 = vpop.f32.mrb[46].mxu1 }
0x1081   :  { %v1645_v4 = vpack.c.bf16 %v1599_v58, %v1599_v58  ;;  %v3353_v7 = vpop.f32.mrb[47].mxu1 }
0x1083   :  { %v1650_v9 = vsel %vm306_vm2, %v1645_v4, 0 }
0x1084   :  { %3363 = vmatpush3.bf16.xpose.msra.mxu1 %v1650_v9 }
0x1085   :  { %3374 = vmatprep.subr.bf16.mxu1 %v3642_v8 }
0x108b   :  { %3365 = vmatmul.mubr.msk.bf16.vlgmr.msra.gmra.mrb[48].mxu1 %vm306_vm2, %v1644_v16 }
0x108c   :  { %3375 = vmatpush3.bf16.msra.mxu1 %v3839_v43  ;;  %3378 = vmatprep.mubr.msk.bf16.mxu1 %vm3643_vm1, %v3642_v8 }
0x108d   :  { %3376 = vmatprep.subr.bf16.mxu1 %v3642_v8 }
0x1090   :  { %3377 = vmatpush3.bf16.msra.mxu1 %v3847_v48 }
0x1091   :  { %3390 = vmatprep.subr.bf16.mxu1 %v3642_v8 }
0x1093   :  { %3379 = vmatmul.mubr.msk.bf16.vlgmr.msra.gmra.mrb[52].mxu1 %vm62_vm0, %v4171_v10 }
0x1094   :  { %3391 = vmatpush3.bf16.msra.mxu1 %v3857_v49  ;;  %3394 = vmatprep.mubr.msk.bf16.mxu1 %vm3643_vm1, %v3642_v8 }
0x1095   :  { %3392 = vmatprep.subr.bf16.mxu1 %v3642_v8 }
0x1098   :  { %3393 = vmatpush3.bf16.msra.mxu1 %v3866_v50 }
0x1099   :  { %3404 = vmatprep.subr.bf16.mxu1 %v3642_v8 }
0x109b   :  { %3395 = vmatmul.mubr.msk.bf16.vlgmr.msra.gmra.mrb[56].mxu1 %vm62_vm0, %v4171_v10 }
0x109c   :  { %3406 = vmatprep.mubr.msk.bf16.mxu1 %vm3643_vm1, %v3642_v8 }
0x115e   :  { %v1686_v28 = vpop.f32.mrb[48].mxu1 }
0x115f   :  { %v1692_v35 = vsel %vm3877_vm4, %v1686_v28, -1e+30  ;;  %v3366_v43 = vpop.f32.mrb[49].mxu1 }
0x1160   :  { %v1689_v48 = vpop.f32.mrb[50].mxu1  ;;  %v1693_v49 = vsel %vm306_vm2, %v1692_v35, -inf }
0x1161   :  { %1694 = vmax.xlane.f32.xlu0 %v1693_v49  ;;  %v3367_v53 = vpop.f32.mrb[51].mxu1 }
0x1166   :  { %v1787_v22 = vpop.f32.mrb[52].mxu1 }
0x1167   :  { %v3380_v50 = vpop.f32.mrb[53].mxu1  ;;  %v1788_v43 = vadd.f32 %v3923_v45, %v1787_v22 }
0x1168   :  { %v1790_v23 = vpop.f32.mrb[54].mxu1 }
0x1169   :  { %v3381_v13 = vpop.f32.mrb[55].mxu1  ;;  %v1873_v48 = vpack.c.bf16 %v1788_v43, %v1788_v43 }
0x116e   :  { %v1867_v17 = vpop.f32.mrb[56].mxu1 }
0x116f   :  { %v1868_v24 = vadd.f32 %v3887_v1, %v1867_v17  ;;  %v3396_v19 = vpop.f32.mrb[57].mxu1 }
0x1170   :  { %v1870_v29 = vpop.f32.mrb[58].mxu1 }
0x1171   :  { %v1934_v32 = vpack.c.bf16 %v1868_v24, %v1868_v24  ;;  %v3397_v34 = vpop.f32.mrb[59].mxu1 }
0x1173   :  { %v1939_v42 = vsel %vm370_vm3, %v1934_v32, 0 }
0x1174   :  { %3405 = vmatpush3.bf16.msra.mxu1 %v1939_v42 }
0x1175   :  { %3416 = vmatprep.subr.bf16.mxu1 %v3642_v8 }
0x11ee   :  { %v1695_v44 = vpop.xlane.xlu0 %1694 }
0x11ef   :  { %v1696_v21 = vsub.f32 %v1692_v35, %v1695_v44 }
0x11f1   :  { %v1697_v46 = vmul.f32 1.442695, %v1696_v21 }
0x11f3   :  { %3593 = vpow2.f32 %v1697_v46 }
0x11fd   :  { %v3594_v26 = vpop.eup %3593 }
0x11fe   :  { %v1699_v52 = vsel %vm306_vm2, %v3594_v26, 0.0 }
0x11ff   :  { %1700 = vadd.xlane.f32.xlu1 %v1699_v52 }
0x128c   :  { %v1701_v20 = vpop.xlane.xlu1 %1700 }
0x128d   :  { %3595 = vrcp.f32 %v1701_v20 }
0x1297   :  { %v3596_v1 = vpop.eup %3595 }
0x1298   :  { %v1703_v57 = vmul.f32 %v3596_v1, %v3594_v26 }
0x129a   :  { %v1704_v58 = vpack.c.bf16 %v1703_v57, %v1703_v57 }
0x129c   :  { %3371 = vmatmul.mubr.msk.bf16.vlgmr.msra.gmra.mrb[60].mxu0 %vm306_vm2, %v1704_v58 }
0x129d   :  { %3383 = vmatpush3.bf16.msra.mxu0 %v3896_v27  ;;  %3386 = vmatprep.mubr.msk.bf16.mxu0 %vm3643_vm1, %v3642_v8 }
0x129e   :  { %3384 = vmatprep.subr.bf16.mxu0 %v3642_v8 }
0x12a1   :  { %3385 = vmatpush3.bf16.msra.mxu0 %v3903_v30 }
0x12a2   :  { %3398 = vmatprep.subr.bf16.mxu0 %v3642_v8 }
0x12a4   :  { %3387 = vmatmul.mubr.msk.bf16.vlgmr.msra.gmra.mrb[64].mxu0 %vm62_vm0, %v4171_v10 }
0x12a5   :  { %3400 = vmatprep.mubr.msk.bf16.mxu0 %vm3643_vm1, %v3642_v8 }
0x136f   :  { %v1746_v37 = vpop.f32.mrb[60].mxu0 }
0x1370   :  { %v3372_v59 = vpop.f32.mrb[61].mxu0  ;;  %v1752_v42 = vpack.c.bf16 %v1746_v37, %v1746_v37 }
0x1371   :  { %v1749_v4 = vpop.f32.mrb[62].mxu0 }
0x1372   :  { %v3373_v7 = vpop.f32.mrb[63].mxu0 }
0x1377   :  { %v1827_v27 = vpop.f32.mrb[64].mxu0 }
0x1378   :  { %v1828_v9 = vadd.f32 %v3917_v36, %v1827_v27  ;;  %v3388_v14 = vpop.f32.mrb[65].mxu0 }
0x1379   :  { %v1830_v16 = vpop.f32.mrb[66].mxu0 }
0x137a   :  { %v1874_v28 = vpack.c.bf16 %v1828_v9, %v1828_v9  ;;  %v3389_v35 = vpop.f32.mrb[67].mxu0 }
0x137c   :  { %v1879_v30 = vsel %vm306_vm2, %v1874_v28, 0 }
0x137d   :  { %3399 = vmatpush3.bf16.xpose.msra.mxu0 %v1879_v30 }
0x137e   :  { %3410 = vmatprep.subr.bf16.mxu0 %v3642_v8 }
0x1384   :  { %3401 = vmatmul.mubr.msk.bf16.vlgmr.msra.gmra.mrb[68].mxu0 %vm306_vm2, %v1873_v48 }
0x1385   :  { %3411 = vmatpush3.bf16.msra.mxu0 %v3939_v2  ;;  %3412 = vmatprep.mubr.msk.bf16.mxu0 %vm3643_vm1, %v3642_v8 }
0x1386   :  { %3422 = vmatprep.subr.bf16.mxu0 %v3642_v8 }
0x1457   :  { %v1915_v36 = vpop.f32.mrb[68].mxu0 }
0x1458   :  { %v1921_v49 = vsel %vm3877_vm4, %v1915_v36, -1e+30  ;;  %v3402_v53 = vpop.f32.mrb[69].mxu0 }
0x1459   :  { %v1918_v50 = vpop.f32.mrb[70].mxu0  ;;  %v1922_v45 = vsel %vm306_vm2, %v1921_v49, -inf }
0x145a   :  { %1923 = vmax.xlane.f32.xlu0 %v1922_v45  ;;  %v3403_v22 = vpop.f32.mrb[71].mxu0 }
0x14e7   :  { %v1924_v23 = vpop.xlane.xlu0 %1923 }
0x14e8   :  { %v1925_v13 = vsub.f32 %v1921_v49, %v1924_v23 }
0x14ea   :  { %v1926_v17 = vmul.f32 1.442695, %v1925_v13 }
0x14ec   :  { %3597 = vpow2.f32 %v1926_v17 }
0x14f6   :  { %v3598_v2 = vpop.eup %3597 }
0x14f7   :  { %v1928_v24 = vsel %vm306_vm2, %v3598_v2, 0.0 }
0x14f8   :  { %1929 = vadd.xlane.f32.xlu1 %v1928_v24 }
0x1585   :  { %v1930_v19 = vpop.xlane.xlu1 %1929 }
0x1586   :  { %3599 = vrcp.f32 %v1930_v19 }
0x1590   :  { %v3600_v29 = vpop.eup %3599 }
0x1591   :  { %v1932_v32 = vmul.f32 %v3600_v29, %v3598_v2 }
0x1593   :  { %v1933_v34 = vpack.c.bf16 %v1932_v32, %v1932_v32 }
0x1595   :  { %3407 = vmatmul.mubr.msk.bf16.vlgmr.msra.gmra.mrb[60].mxu1 %vm306_vm2, %v1933_v34 }
0x1596   :  { %3417 = vmatpush3.bf16.msra.mxu1 %v3947_v11  ;;  %3418 = vmatprep.mubr.msk.bf16.mxu1 %vm3643_vm1, %v3642_v8 }
0x1597   :  { %3430 = vmatprep.subr.bf16.mxu1 %v3642_v8 }
0x159d   :  { %3419 = vmatmul.mubr.msk.bf16.vlgmr.msra.gmra.mrb[64].mxu1 %vm306_vm2, %v1752_v42 }
0x159e   :  { %3431 = vmatpush3.bf16.msra.mxu1 %v3957_v12  ;;  %3434 = vmatprep.mubr.msk.bf16.mxu1 %vm3643_vm1, %v3642_v8 }
0x159f   :  { %3432 = vmatprep.subr.bf16.mxu1 %v3642_v8 }
0x15a2   :  { %3433 = vmatpush3.bf16.msra.mxu1 %v3964_v15 }
0x15a3   :  { %3446 = vmatprep.subr.bf16.mxu1 %v3642_v8 }
0x15a5   :  { %3435 = vmatmul.mubr.msk.bf16.vlgmr.msra.gmra.mrb[68].mxu1 %vm62_vm0, %v4171_v10 }
0x15a6   :  { %3448 = vmatprep.mubr.msk.bf16.mxu1 %vm3643_vm1, %v3642_v8 }
0x1668   :  { %v1975_v11 = vpop.f32.mrb[60].mxu1 }
0x1669   :  { %v1981_v44 = vpack.c.bf16 %v1975_v11, %v1975_v11  ;;  %v3408_v21 = vpop.f32.mrb[61].mxu1 }
0x166a   :  { %v1978_v46 = vpop.f32.mrb[62].mxu1 }
0x166b   :  { %v3409_v12 = vpop.f32.mrb[63].mxu1  ;;  %3413 = vmatmul.mubr.msk.bf16.vlgmr.msra.gmra.mrb[72].mxu0 %vm306_vm2, %v1981_v44 }
0x166c   :  { %3423 = vmatpush3.bf16.msra.mxu0 %v3978_v18  ;;  %3426 = vmatprep.mubr.msk.bf16.mxu0 %vm3643_vm1, %v3642_v8 }
0x166d   :  { %3424 = vmatprep.subr.bf16.mxu0 %v3642_v8 }
0x1670   :  { %v2062_v15 = vpop.f32.mrb[64].mxu1  ;;  %3425 = vmatpush3.bf16.msra.mxu0 %v3985_v31 }
0x1671   :  { %v3420_v26 = vpop.f32.mrb[65].mxu1  ;;  %3438 = vmatprep.subr.bf16.mxu0 %v3642_v8 }
0x1672   :  { %v2065_v52 = vpop.f32.mrb[66].mxu1 }
0x1673   :  { %v3421_v20 = vpop.f32.mrb[67].mxu1  ;;  %3427 = vmatmul.mubr.msk.bf16.vlgmr.msra.gmra.mrb[76].mxu0 %vm62_vm0, %v4171_v10 }
0x1674   :  { %3439 = vmatpush3.bf16.msra.mxu0 %v3994_v33  ;;  %3442 = vmatprep.mubr.msk.bf16.mxu0 %vm3643_vm1, %v3642_v8 }
0x1675   :  { %3440 = vmatprep.subr.bf16.mxu0 %v3642_v8 }
0x1678   :  { %v2142_v18 = vpop.f32.mrb[68].mxu1  ;;  %3441 = vmatpush3.bf16.msra.mxu0 %v4003_v40 }
0x1679   :  { %v2143_v31 = vadd.f32 %v4011_v41, %v2142_v18  ;;  %v3436_v1 = vpop.f32.mrb[69].mxu1  ;;  %3452 = vmatprep.subr.bf16.mxu0 %v3642_v8 }
0x167a   :  { %v2145_v57 = vpop.f32.mrb[70].mxu1 }
0x167b   :  { %v2189_v58 = vpack.c.bf16 %v2143_v31, %v2143_v31  ;;  %v3437_v37 = vpop.f32.mrb[71].mxu1  ;;  %3443 = vmatmul.mubr.msk.bf16.vlgmr.msra.gmra.mrb[80].mxu0 %vm62_vm0, %v4171_v10 }
0x167c   :  { %3454 = vmatprep.mubr.msk.bf16.mxu0 %vm3643_vm1, %v3642_v8 }
0x167d   :  { %v2194_v33 = vsel %vm306_vm2, %v2189_v58, 0 }
0x167e   :  { %3447 = vmatpush3.bf16.xpose.msra.mxu1 %v2194_v33 }
0x167f   :  { %3458 = vmatprep.subr.bf16.mxu1 %v3642_v8 }
0x173e   :  { %v2019_v40 = vpop.f32.mrb[72].mxu0 }
0x173f   :  { %v4294_v59 = vadd.f32 %v2062_v15, %v2019_v40  ;;  %v3414_v41 = vpop.f32.mrb[73].mxu0 }
0x1740   :  { %v2022_v4 = vpop.f32.mrb[74].mxu0 }
0x1741   :  { %v3415_v7 = vpop.f32.mrb[75].mxu0 }
0x1746   :  { %v2102_v27 = vpop.f32.mrb[76].mxu0 }
0x1747   :  { %v2103_v9 = vadd.f32 %v4027_v60, %v2102_v27  ;;  %v3428_v14 = vpop.f32.mrb[77].mxu0 }
0x1748   :  { %v2105_v16 = vpop.f32.mrb[78].mxu0 }
0x1749   :  { %v2188_v28 = vpack.c.bf16 %v2103_v9, %v2103_v9  ;;  %v3429_v35 = vpop.f32.mrb[79].mxu0 }
0x174b   :  { %3449 = vmatmul.mubr.msk.bf16.vlgmr.msra.gmra.mrb[72].mxu1 %vm306_vm2, %v2188_v28 }
0x174c   :  { %3459 = vmatpush3.bf16.msra.mxu1 %v4049_v55  ;;  %3460 = vmatprep.mubr.msk.bf16.mxu1 %vm3643_vm1, %v3642_v8 }
0x174d   :  { %3472 = vmatprep.subr.bf16.mxu1 %v3642_v8 }
0x174e   :  { %v2182_v30 = vpop.f32.mrb[80].mxu0 }
0x174f   :  { %v2183_v43 = vadd.f32 %v4034_v5, %v2182_v30  ;;  %v3444_v48 = vpop.f32.mrb[81].mxu0 }
0x1750   :  { %v2185_v36 = vpop.f32.mrb[82].mxu0 }
0x1751   :  { %v2249_v49 = vpack.c.bf16 %v2183_v43, %v2183_v43  ;;  %v3445_v60 = vpop.f32.mrb[83].mxu0 }
0x1753   :  { %v2254_v53 = vsel %vm370_vm3, %v2249_v49, 0 }
0x1754   :  { %3453 = vmatpush3.bf16.msra.mxu0 %v2254_v53 }
0x1755   :  { %3464 = vmatprep.subr.bf16.mxu0 %v3642_v8 }
0x181e   :  { %v2230_v50 = vpop.f32.mrb[72].mxu1 }
0x181f   :  { %v2236_v55 = vsel %vm3877_vm4, %v2230_v50, -1e+30  ;;  %v3450_v45 = vpop.f32.mrb[73].mxu1 }
0x1820   :  { %v2233_v22 = vpop.f32.mrb[74].mxu1  ;;  %v2237_v23 = vsel %vm306_vm2, %v2236_v55, -inf }
0x1821   :  { %2238 = vmax.xlane.f32.xlu0 %v2237_v23  ;;  %v3451_v13 = vpop.f32.mrb[75].mxu1 }
0x18ae   :  { %v2239_v5 = vpop.xlane.xlu0 %2238 }
0x18af   :  { %v2240_v17 = vsub.f32 %v2236_v55, %v2239_v5 }
0x18b1   :  { %v2241_v2 = vmul.f32 1.442695, %v2240_v17 }
0x18b3   :  { %3601 = vpow2.f32 %v2241_v2 }
0x18bd   :  { %v3602_v24 = vpop.eup %3601 }
0x18be   :  { %v2243_v19 = vsel %vm306_vm2, %v3602_v24, 0.0 }
0x18bf   :  { %2244 = vadd.xlane.f32.xlu1 %v2243_v19 }
0x194c   :  { %v2245_v29 = vpop.xlane.xlu1 %2244 }
0x194d   :  { %3603 = vrcp.f32 %v2245_v29 }
0x1957   :  { %v3604_v32 = vpop.eup %3603 }
0x1958   :  { %v2247_v34 = vmul.f32 %v3604_v32, %v3602_v24 }
0x195a   :  { %v2248_v42 = vpack.c.bf16 %v2247_v34, %v2247_v34 }
0x195c   :  { %3455 = vmatmul.mubr.msk.bf16.vlgmr.msra.gmra.mrb[84].mxu0 %vm306_vm2, %v2248_v42 }
0x195d   :  { %3465 = vmatpush3.bf16.msra.mxu0 %v4056_v61  ;;  %3468 = vmatprep.mubr.msk.bf16.mxu0 %vm3643_vm1, %v3642_v8 }
0x195e   :  { %3466 = vmatprep.subr.bf16.mxu0 %v3642_v8 }
0x1961   :  { %3467 = vmatpush3.bf16.msra.mxu0 %v4063_v63 }
0x1962   :  { %3480 = vmatprep.subr.bf16.mxu0 %v3642_v8 }
0x1964   :  { %3469 = vmatmul.mubr.msk.bf16.vlgmr.msra.gmra.mrb[88].mxu0 %vm62_vm0, %v4171_v10 }
0x1965   :  { %3481 = vmatpush3.bf16.msra.mxu0 %v4072_v0  ;;  %3484 = vmatprep.mubr.msk.bf16.mxu0 %vm3643_vm1, %v3642_v8 }
0x1966   :  { %3482 = vmatprep.subr.bf16.mxu0 %v3642_v8 }
0x1969   :  { %3483 = vmatpush3.bf16.msra.mxu0 %v4081_v3 }
0x196a   :  { %3494 = vmatprep.subr.bf16.mxu0 %v3642_v8 }
0x196c   :  { %3485 = vmatmul.mubr.msk.bf16.vlgmr.msra.gmra.mrb[92].mxu0 %vm62_vm0, %v4171_v10 }
0x196d   :  { %3496 = vmatprep.mubr.msk.bf16.mxu0 %vm3643_vm1, %v3642_v8 }
0x1a2f   :  { %v2290_v61 = vpop.f32.mrb[84].mxu0 }
0x1a30   :  { %v2296_v63 = vpack.c.bf16 %v2290_v61, %v2290_v61  ;;  %v3456_v11 = vpop.f32.mrb[85].mxu0 }
0x1a31   :  { %v2293_v44 = vpop.f32.mrb[86].mxu0 }
0x1a32   :  { %v3457_v0 = vpop.f32.mrb[87].mxu0  ;;  %3461 = vmatmul.mubr.msk.bf16.vlgmr.msra.gmra.mrb[76].mxu1 %vm306_vm2, %v2296_v63 }
0x1a33   :  { %3473 = vmatpush3.bf16.msra.mxu1 %v4095_v6  ;;  %3476 = vmatprep.mubr.msk.bf16.mxu1 %vm3643_vm1, %v3642_v8 }
0x1a34   :  { %3474 = vmatprep.subr.bf16.mxu1 %v3642_v8 }
0x1a37   :  { %v2375_v3 = vpop.f32.mrb[88].mxu0  ;;  %3475 = vmatpush3.bf16.msra.mxu1 %v4102_v25 }
0x1a38   :  { %v3470_v21 = vpop.f32.mrb[89].mxu0  ;;  %3488 = vmatprep.subr.bf16.mxu1 %v3642_v8  ;;  %v2376_v27 = vadd.f32 %v4133_v56, %v2375_v3 }
0x1a39   :  { %v2378_v46 = vpop.f32.mrb[90].mxu0 }
0x1a3a   :  { %v3471_v12 = vpop.f32.mrb[91].mxu0  ;;  %3477 = vmatmul.mubr.msk.bf16.vlgmr.msra.gmra.mrb[80].mxu1 %vm62_vm0, %v4171_v10  ;;  %v2461_v9 = vpack.c.bf16 %v2376_v27, %v2376_v27 }
0x1a3b   :  { %3490 = vmatprep.mubr.msk.bf16.mxu1 %vm3643_vm1, %v3642_v8 }
0x1a3f   :  { %v2455_v6 = vpop.f32.mrb[92].mxu0 }
0x1a40   :  { %v2456_v15 = vadd.f32 %v4116_v38, %v2455_v6  ;;  %v3486_v26 = vpop.f32.mrb[93].mxu0 }
0x1a41   :  { %v2458_v52 = vpop.f32.mrb[94].mxu0  ;;  %v3563_v26 = vld [vmem:[%s4462_s13] sm:$0xff]  }
0x1a42   :  { %v2522_v20 = vpack.c.bf16 %v2456_v15, %v2456_v15  ;;  %v3487_v18 = vpop.f32.mrb[95].mxu0 }
0x1a44   :  { %v2527_v25 = vsel %vm370_vm3, %v2522_v20, 0 }
0x1a45   :  { %3495 = vmatpush3.bf16.msra.mxu0 %v2527_v25 }
0x1a46   :  { %3506 = vmatprep.subr.bf16.mxu0 %v3642_v8 }
0x1b05   :  { %v2334_v31 = vpop.f32.mrb[76].mxu1 }
0x1b06   :  { %v2340_v1 = vadd.f32 %v2334_v31, %v4294_v59  ;;  %v3462_v57 = vpop.f32.mrb[77].mxu1 }
0x1b07   :  { %v2337_v10 = vpop.f32.mrb[78].mxu1 }
0x1b08   :  { %v3463_v58 = vpop.f32.mrb[79].mxu1 }
0x1b09   :  { %v3023_v58 = vld [vmem:[%s4460_s11] ss:$0 sm:$0xff] }
0x1b0d   :  { %v2415_v37 = vpop.f32.mrb[80].mxu1 }
0x1b0e   :  { %v2416_v33 = vadd.f32 %v4127_v62, %v2415_v37  ;;  %v3478_v40 = vpop.f32.mrb[81].mxu1  ;;  %v3022_v62 = vld [vmem:[%s4459_s10] ss:$0 sm:$0xff]  ;;  %s2877_s10 = sshll.u32 %s3644_s20, 4  ;;  %s2878_s10 = int_to_ptr.vmem [resolvable:$true] %s2877_s10 }
0x1b0f   :  { %v2418_v38 = vpop.f32.mrb[82].mxu1  ;;  %v2621_v59 = vadd.f32 %v3022_v62, %v4200_v51  ;;  %p3623_p1 = scmp.lt.s32.totalorder %s2878_s10, %s2878_s10 }
0x1b10   :  { %v2462_v41 = vpack.c.bf16 %v2416_v33, %v2416_v33  ;;  %v3479_v4 = vpop.f32.mrb[83].mxu1  ;;  %v3024_v38 = vld [vmem:[%s4461_s12] ss:$0 sm:$0xff] }
0x1b12   :  { %v2467_v7 = vsel %vm306_vm2, %v2462_v41, 0 }
0x1b13   :  { %3489 = vmatpush3.bf16.xpose.msra.mxu1 %v2467_v7 }
0x1b14   :  { %3500 = vmatprep.subr.bf16.mxu1 %v3642_v8 }
0x1b1a   :  { %3491 = vmatmul.mubr.msk.bf16.vlgmr.msra.gmra.mrb[84].mxu1 %vm306_vm2, %v2461_v9  ;;  %v3565_v9 = vld [vmem:[%s4464_s15] sm:$0xff]  }
0x1b1b   :  { %3501 = vmatpush3.bf16.msra.mxu1 %v4158_v39  ;;  %3502 = vmatprep.mubr.msk.bf16.mxu1 %vm3643_vm1, %v3642_v8  ;;  %v3617_v39 = vld [vmem:[%s4470_s26] sm:$0xff]  ;;  %s3618_s26 = scalar_lea.vmem %s2878_s10, 256 }
0x1b1c   :  { %3514 = vmatprep.subr.bf16.mxu1 %v3642_v8  ;;  %v4361_v28 = vadd.f32 %v3617_v39, %v2621_v59  ;;  %v3567_v59 = vld [vmem:[%s4464_s15 + $0x10] sm:$0xff]   ;;  %p3619_p0 = scmp.ne.s32.totalorder %s2878_s10, %s3618_s26  ;;  %p3624_p2 = scmp.lt.s32.totalorder %s3618_s26, %s3618_s26 }
0x1b1d   :  { %v3571_v39 = vld [vmem:[%s4464_s15 + $0x30] sm:$0xff]  }
0x1b1e   :  { %v2627_v48 = vsel %vm62_vm0, %v4361_v28, 0.0  ;;  %p3625_p3 = por %p3624_p2, %p3623_p1 }
0x1b20   :  { %p3626_p4 = pnand %p3625_p3, %p3619_p0 }
0x1bed   :  { %v2503_v14 = vpop.f32.mrb[84].mxu1 }
0x1bee   :  { %v2509_v56 = vsel %vm3877_vm4, %v2503_v14, -1e+30  ;;  %v3492_v16 = vpop.f32.mrb[85].mxu1  ;;  %v3568_v14 = vld [vmem:[%s4464_s15 + $0x18] sm:$0xff]  }
0x1bef   :  { %v2506_v35 = vpop.f32.mrb[86].mxu1  ;;  %v2510_v30 = vsel %vm306_vm2, %v2509_v56, -inf  ;;  %v3570_v16 = vld [vmem:[%s4464_s15 + $0x28] sm:$0xff]  }
0x1bf0   :  { %2511 = vmax.xlane.f32.xlu0 %v2510_v30  ;;  %v3493_v43 = vpop.f32.mrb[87].mxu1  ;;  %v3572_v35 = vld [vmem:[%s4464_s15 + $0x38] sm:$0xff]   ;;  %v3025_v30 = vld [vmem:[%s4463_s14] ss:$0 sm:$0xff] }
0x1bf4   :  { %2628 = vadd.xlane.f32.xlu0 %v2627_v48 }
0x1c7d   :  { %v2512_v51 = vpop.xlane.xlu0 %2511 }
0x1c7e   :  { %v2513_v36 = vsub.f32 %v2509_v56, %v2512_v51  ;;  %v3569_v56 = vld [vmem:[%s4464_s15 + $0x20] sm:$0xff]  }
0x1c80   :  { %v2514_v54 = vmul.f32 1.442695, %v2513_v36 }
0x1c81   :  { %v2629_v49 = vpop.xlane.xlu0 %2628 }
0x1c82   :  { %3605 = vpow2.f32 %v2514_v54  ;;  %v2633_v60 = vmul.f32 0.03125, %v2629_v49 }
0x1c84   :  { %v2635_v53 = vsub.f32 %v4361_v28, %v2633_v60 }
0x1c86   :  { %v2637_v50 = vmul.f32 %v2635_v53, %v2635_v53 }
0x1c88   :  { %v2639_v55 = vsel %vm62_vm0, %v2637_v50, 0.0 }
0x1c89   :  { %2640 = vadd.xlane.f32.xlu0 %v2639_v55 }
0x1c8c   :  { %v3606_v45 = vpop.eup %3605 }
0x1c8d   :  { %v2516_v22 = vsel %vm306_vm2, %v3606_v45, 0.0 }
0x1c8e   :  { %2517 = vadd.xlane.f32.xlu1 %v2516_v22 }
0x1d16   :  { %v2641_v52 = vpop.xlane.xlu0 %2640 }
0x1d17   :  { %v2645_v20 = vmul.f32 0.03125, %v2641_v52 }
0x1d19   :  { %v2647_v18 = vadd.f32 1e-05, %v2645_v20 }
0x1d1b   :  { %v2518_v23 = vpop.xlane.xlu1 %2517 }
0x1d1c   :  { %3607 = vrcp.f32 %v2518_v23 }
0x1d1d   :  { %3609 = vrsqrt.f32 %v2647_v18 }
0x1d26   :  { %v3608_v13 = vpop.eup %3607 }
0x1d27   :  { %v2520_v5 = vmul.f32 %v3608_v13, %v3606_v45  ;;  %v3610_v57 = vpop.eup %3609 }
0x1d28   :  { %v2651_v10 = vmul.f32 %v3610_v57, %v2635_v53 }
0x1d29   :  { %v2521_v17 = vpack.c.bf16 %v2520_v5, %v2520_v5 }
0x1d2a   :  { %v2659_v33 = vmul.f32 %v3023_v58, %v2651_v10 }
0x1d2b   :  { %3497 = vmatmul.mubr.msk.bf16.vlgmr.msra.gmra.mrb[96].mxu0 %vm306_vm2, %v2521_v17 }
0x1d2c   :  { %3510 = vmatprep.mubr.msk.bf16.mxu0 %vm3643_vm1, %v3642_v8  ;;  %3507 = vmatpush3.bf16.msra.mxu0 %v3563_v26  ;;  %v2667_v4 = vadd.f32 %v3024_v38, %v2659_v33 }
0x1d2d   :  { %3508 = vmatprep.subr.bf16.mxu0 %v3642_v8 }
0x1dfe   :  { %v2563_v2 = vpop.f32.mrb[96].mxu0 }
0x1dff   :  { %v2569_v24 = vpack.c.bf16 %v2563_v2, %v2563_v2  ;;  %v3498_v19 = vpop.f32.mrb[97].mxu0 }
0x1e00   :  { %v2566_v29 = vpop.f32.mrb[98].mxu0 }
0x1e01   :  { %v3499_v32 = vpop.f32.mrb[99].mxu0  ;;  %3503 = vmatmul.mubr.msk.bf16.vlgmr.msra.gmra.mrb[88].mxu1 %vm306_vm2, %v2569_v24 }
0x1e02   :  { %3530 = vmatprep.mubr.msk.bf16.mxu1 %vm3643_vm1, %v3642_v8  ;;  %3515 = vmatpush3.bf16.msra.mxu1 %v3565_v9 }
0x1e03   :  { %3516 = vmatprep.subr.bf16.mxu1 %v3642_v8 }
0x1ed4   :  { %v2607_v34 = vpop.f32.mrb[88].mxu1 }
0x1ed5   :  { %v2613_v42 = vadd.f32 %v2607_v34, %v2340_v1  ;;  %v3504_v61 = vpop.f32.mrb[89].mxu1 }
0x1ed6   :  { %v2610_v63 = vpop.f32.mrb[90].mxu1 }
0x1ed7   :  { %v2622_v11 = vadd.f32 %v3022_v62, %v2613_v42  ;;  %v3505_v44 = vpop.f32.mrb[91].mxu1  ;;  %v3566_v62 = vld [vmem:[%s4464_s15 + $0x8] sm:$0xff]   ;;  %v3029_v63 = vld [vmem:[%s4465_s16] ss:$0 sm:$0xff] }
0x1ed8   :  { %3517 = vmatpush3.bf16.msra.mxu1 %v3566_v62 }
0x1ed9   :  { %v4376_v0 = vadd.f32 %v2622_v11, %v4146_v47  ;;  %v3564_v47 = vld [vmem:[%s4462_s13 + $0x8] sm:$0xff]   ;;  %3518 = vmatprep.subr.bf16.mxu1 %v3642_v8 }
0x1eda   :  { %3509 = vmatpush3.bf16.msra.mxu0 %v3564_v47 }
0x1edb   :  { %v2630_v3 = vsel %vm62_vm0, %v4376_v0, 0.0 }
0x1edc   :  { %2631 = vadd.xlane.f32.xlu1 %v2630_v3  ;;  %3519 = vmatpush3.bf16.msra.mxu1 %v3567_v59 }
0x1edd   :  { %3520 = vmatprep.subr.bf16.mxu1 %v3642_v8 }
0x1ee0   :  { %3521 = vmatpush3.bf16.msra.mxu1 %v3568_v14 }
0x1ee1   :  { %3522 = vmatprep.subr.bf16.mxu1 %v3642_v8 }
0x1ee4   :  { %3523 = vmatpush3.bf16.msra.mxu1 %v3569_v56 }
0x1ee5   :  { %3524 = vmatprep.subr.bf16.mxu1 %v3642_v8 }
0x1ee8   :  { %3525 = vmatpush3.bf16.msra.mxu1 %v3570_v16 }
0x1ee9   :  { %3526 = vmatprep.subr.bf16.mxu1 %v3642_v8 }
0x1eec   :  { %3527 = vmatpush3.bf16.msra.mxu1 %v3571_v39 }
0x1eed   :  { %3528 = vmatprep.subr.bf16.mxu1 %v3642_v8 }
0x1ef0   :  { %3529 = vmatpush3.bf16.msra.mxu1 %v3572_v35 }
0x1f69   :  { %v2632_v21 = vpop.xlane.xlu1 %2631 }
0x1f6a   :  { %v2634_v46 = vmul.f32 0.03125, %v2632_v21 }
0x1f6c   :  { %v2636_v12 = vsub.f32 %v4376_v0, %v2634_v46 }
0x1f6e   :  { %v2638_v6 = vmul.f32 %v2636_v12, %v2636_v12 }
0x1f70   :  { %v2642_v15 = vsel %vm62_vm0, %v2638_v6, 0.0 }
0x1f71   :  { %2643 = vadd.xlane.f32.xlu1 %v2642_v15 }
0x1ffe   :  { %v2644_v25 = vpop.xlane.xlu1 %2643 }
0x1fff   :  { %v2646_v31 = vmul.f32 0.03125, %v2644_v25 }
0x2001   :  { %v2648_v1 = vadd.f32 1e-05, %v2646_v31 }
0x2003   :  { %3611 = vrsqrt.f32 %v2648_v1 }
0x200d   :  { %v3612_v37 = vpop.eup %3611 }
0x200e   :  { %v2652_v40 = vmul.f32 %v3612_v37, %v2636_v12 }
0x2010   :  { %v2660_v41 = vmul.f32 %v3023_v58, %v2652_v40 }
0x2012   :  { %v2668_v7 = vadd.f32 %v3024_v38, %v2660_v41 }
0x2014   :  { %v2669_v27 = vpack.c.bf16 %v2668_v7, %v2667_v4 }
0x2016   :  { %3511 = vmatmul.mubr.msk.bf16.vlgmr.msra.gmra.mrb[100].mxu0 %vm62_vm0, %v2669_v27 }
0x20e9   :  { %v2730_v43 = vpop.f32.mrb[100].mxu0 }
0x20ea   :  { %v2731_v48 = vadd.f32 %v3025_v30, %v2730_v43  ;;  %v3512_v51 = vpop.f32.mrb[101].mxu0 }
0x20eb   :  { %v2733_v36 = vpop.f32.mrb[102].mxu0 }
0x20ec   :  { %v2739_v54 = vmul.f32 0.044715, %v2731_v48  ;;  %v2734_v49 = vadd.f32 %v3025_v30, %v2733_v36  ;;  %v3513_v60 = vpop.f32.mrb[103].mxu0  ;;  %v2737_v19 = vmul.f32 0.5, %v2731_v48 }
0x20ee   :  { %v2741_v53 = vmul.f32 %v2739_v54, %v2731_v48  ;;  %v2740_v50 = vmul.f32 0.044715, %v2734_v49  ;;  %v2738_v29 = vmul.f32 0.5, %v2734_v49 }
0x20f0   :  { %v2743_v55 = vmul.f32 %v2741_v53, %v2731_v48  ;;  %v2742_v45 = vmul.f32 %v2740_v50, %v2734_v49 }
0x20f2   :  { %v2745_v22 = vadd.f32 %v2743_v55, %v2731_v48  ;;  %v2744_v23 = vmul.f32 %v2742_v45, %v2734_v49 }
0x20f4   :  { %v2747_v13 = vmul.f32 0.7978846, %v2745_v22  ;;  %v2746_v8 = vadd.f32 %v2744_v23, %v2734_v49 }
0x20f6   :  { %3613 = vtanh.f32 %v2747_v13  ;;  %v2748_v5 = vmul.f32 0.7978846, %v2746_v8 }
0x20f8   :  { %3615 = vtanh.f32 %v2748_v5 }
0x2100   :  { %v3614_v17 = vpop.eup %3613 }
0x2101   :  { %v2751_v2 = vadd.f32 1.0, %v3614_v17 }
0x2102   :  { %v3616_v24 = vpop.eup %3615 }
0x2103   :  { %v2752_v32 = vadd.f32 1.0, %v3616_v24  ;;  %v2753_v34 = vmul.f32 %v2751_v2, %v2737_v19 }
0x2105   :  { %v2754_v42 = vmul.f32 %v2752_v32, %v2738_v29 }
0x2107   :  { %v2755_v61 = vpack.c.bf16 %v2754_v42, %v2753_v34 }
0x2109   :  { %3531 = vmatmul.mubr.bf16.vlgmr.msra.gmra.mrb[92].mxu1 %v2755_v61 }
0x21dc   :  { %v2861_v11 = vpop.f32.mrb[92].mxu1 }
0x21dd   :  { %v2862_v44 = vadd.f32 %v3029_v63, %v2861_v11  ;;  %v3532_v3 = vpop.f32.mrb[93].mxu1 }
0x21de   :  { %v2864_v21 = vpop.f32.mrb[94].mxu1 }
0x21df   :  { %v2868_v46 = vadd.f32 %v2862_v44, %v4361_v28  ;;  %v2865_v12 = vadd.f32 %v3029_v63, %v2864_v21  ;;  %v3533_v6 = vpop.f32.mrb[95].mxu1 }
0x21e1   :  { %2870 = vst.msk [vmem:[#allocation2] sm:$0xff] %vm62_vm0, %v2868_v46  ;;  %v2869_v15 = vadd.f32 %v2865_v12, %v4376_v0 }
0x21e3   :  { %2871 = vst.msk [vmem:[#allocation2 + $0x8] sm:$0xff] %vm62_vm0, %v2869_v15 }
0x21e4   :  { %3629 = shalt.err (!%p3626_p4)
}
0x21e5   :  { %s3630_s22 = scalar_lea.hbm %s4466_s17, 256 }
0x21e6   :  { %p3631_p5 = scmp.ne.s32.totalorder %s4466_s17, %s3630_s22  ;;  %p3634_p6 = scmp.lt.u32.totalorder %s3630_s22, %s4466_s17 }
0x21e8   :  { %p3636_p7 = pnand %p3634_p6, %p3631_p5 }
0x21ea   :  { %3639 = shalt.err (!%p3636_p7)
}
0x21eb   :  { %s3645_s2 = smov 128   ;;  %s3646_s7 = smov 8  }
0x21ec   :  { %2883 = dma.vmem_to_hbm [thread:$0]  %s2878_s10, 256, %s4466_s17, [#allocation3], %s3645_s2, %s3645_s2, %s3646_s7  }
0x21ed   :  { %3640 = dma.done.wait [#allocation3], 256  }
0x21ee   :  { %3641 = vsyncadd [#allocation3], 4294967040 }
0x21ef   :  { %2887 = vsyncpa [#allocation3], 1 }

</bundles_post_ra>
